<compile_context>
chip_gen: v7x
topology: tpu7x:2x2x1
jax: 0.10.0
libtpu: 0.0.40
codegen_flags: <defaults>
</compile_context>

<pallas_src>
import math

import jax
import jax.numpy as jnp
from jax.experimental import pallas as pl
from jax.experimental.pallas import tpu as pltpu

NUM_FLOWS = 4
D = 4
D_HALF = D // 2
HIDDEN = 32
FUSED_H = 2 * HIDDEN          # s-net and t-net fused side by side
NEG_SLOPE = 0.01              # PyTorch LeakyReLU default
LOG_2PI = math.log(2.0 * math.pi)


def _leaky_relu(x):
    return jnp.where(x > 0, x, NEG_SLOPE * x)


# ----------------------------- Pallas kernel -----------------------------
def realnvp_kernel(xa_ref, xb_ref,
                   w1_ref, b1_ref, w2_ref, b2_ref, w3_ref, b3_ref,
                   out_ref):
    # Canonical (flip-folded) frame, transposed layout: batch on lanes.
    za = xa_ref[...]                                   # (D_HALF, TB) f32
    zb = xb_ref[...]
    tb = za.shape[1]
    log_det = jnp.zeros((1, tb), jnp.float32)

    for i in range(NUM_FLOWS):                         # static unroll over flows
        active = za if (i % 2 == 0) else zb
        passive = zb if (i % 2 == 0) else za

        # Fused s/t MLP, lane-dense activations (FUSED_H, TB).
        h = _leaky_relu(jnp.dot(w1_ref[i], active,
                                preferred_element_type=jnp.float32) + b1_ref[i])
        h = _leaky_relu(jnp.dot(w2_ref[i], h,
                                preferred_element_type=jnp.float32) + b2_ref[i])
        o = jnp.dot(w3_ref[i], h, preferred_element_type=jnp.float32) + b3_ref[i]

        s = jnp.tanh(o[:D_HALF, :])                    # (D_HALF, TB)
        t = o[D_HALF:, :]
        new_passive = (passive - t) * jnp.exp(-s)      # forward coupling

        if i % 2 == 0:
            zb = new_passive
        else:
            za = new_passive

        log_det = log_det - jnp.sum(s, axis=0, keepdims=True)

    # Standard multivariate Normal prior log-prob (permutation-invariant).
    sumsq = (jnp.sum(za * za, axis=0, keepdims=True)
             + jnp.sum(zb * zb, axis=0, keepdims=True))        # (1, TB)
    logp = -0.5 * D * LOG_2PI - 0.5 * sumsq                    # (1, TB)

    # Per-tile partial NLL sum; reduced in the wrapper.
    out_ref[...] = -jnp.sum(logp + log_det, axis=1, keepdims=True)   # (1, 1)


# ----------------------------- wrapper -----------------------------
def _choose_tile_b(B, max_tile=2048):
    if B <= max_tile:
        return B
    for t in (2048, 1024, 512, 256, 128):
        if B % t == 0:
            return t
    return B  # fall back to a single full-batch tile


def realnvp_forward(x, kernel_params, reduction="avg"):
    """Returns -(prior.log_prob(z) + log_det_J) reduced over the batch."""
    # pad_to_even (matches the module; no-op for even D)
    if x.shape[1] % 2 != 0:
        x = jnp.pad(x, ((0, 0), (0, 1)))
    B, d = x.shape
    assert d == D, f"kernel is specialized for D={D}, got {d}"

    tile_b = _choose_tile_b(B)
    assert B % tile_b == 0
    num_tiles = B // tile_b

    xt = jnp.transpose(x.astype(jnp.float32))          # (D, B): batch on lanes
    xa_t = xt[:D_HALF, :]                              # (D_HALF, B)
    xb_t = xt[D_HALF:, :]

    w1, b1, w2, b2, w3, b3 = kernel_params

    def full_spec(arr):
        n = arr.ndim
        return pl.BlockSpec(arr.shape, lambda i, _n=n: (0,) * _n)

    in_specs = [
        pl.BlockSpec((D_HALF, tile_b), lambda i: (0, i)),
        pl.BlockSpec((D_HALF, tile_b), lambda i: (0, i)),
    ] + [full_spec(a) for a in (w1, b1, w2, b2, w3, b3)]

    partials = pl.pallas_call(
        realnvp_kernel,
        out_shape=jax.ShapeDtypeStruct((num_tiles, 1), jnp.float32),
        grid=(num_tiles,),
        in_specs=in_specs,
        out_specs=pl.BlockSpec((1, 1), lambda i: (i, 0)),
        compiler_params=pltpu.CompilerParams(
            dimension_semantics=("parallel",)),        # independent per-tile partials
    )(xa_t, xb_t, w1, b1, w2, b2, w3, b3)

    total = jnp.sum(partials)
    return total / B if reduction == "avg" else total


# --------------------- parameter prep (fuse + fold flip + transpose) ---------------------
def prepare_kernel_params(raw):
    """Fuse the s/t nets into one MLP per flow, fold z.flip(1) into the weights,
    and transpose everything for the batch-on-lanes layout."""
    (sW1, sb1, sW2, sb2, sW3, sb3,
     tW1, tb1, tW2, tb2, tW3, tb3) = raw

    w1s, b1s, w2s, b2s, w3s, b3s = [], [], [], [], [], []
    for i in range(NUM_FLOWS):
        sw1, sw2, sw3 = sW1[i], sW2[i], sW3[i]
        tw1, tw2, tw3 = tW1[i], tW2[i], tW3[i]
        sb1_, sb2_, sb3_ = sb1[i], sb2[i], sb3[i]
        tb1_, tb2_, tb3_ = tb1[i], tb2[i], tb3[i]

        if i % 2 == 1:
            # Fold the flip: odd-flow coupling is P C P, i.e. the net consumes the
            # reversed half (reverse W1 fan-in rows) and emits reversed outputs
            # (reverse W3 fan-out columns and b3).
            sw1, tw1 = sw1[::-1, :], tw1[::-1, :]
            sw3, tw3 = sw3[:, ::-1], tw3[:, ::-1]
            sb3_, tb3_ = sb3_[::-1], tb3_[::-1]

        # Fuse s-net and t-net (block structure; exact math, half the MXU pushes).
        fW1 = jnp.concatenate([sw1, tw1], axis=1)                  # (D_HALF, 2H)
        fb1 = jnp.concatenate([sb1_, tb1_], axis=0)                # (2H,)
        zhh = jnp.zeros((HIDDEN, HIDDEN), jnp.float32)
        fW2 = jnp.block([[sw2, zhh], [zhh, tw2]])                  # (2H, 2H)
        fb2 = jnp.concatenate([sb2_, tb2_], axis=0)
        zhd = jnp.zeros((HIDDEN, D_HALF), jnp.float32)
        fW3 = jnp.block([[sw3, zhd], [zhd, tw3]])                  # (2H, 2*D_HALF)
        fb3 = jnp.concatenate([sb3_, tb3_], axis=0)

        # Transpose for W @ x (batch on lanes); biases as column vectors.
        w1s.append(fW1.T); b1s.append(fb1[:, None])
        w2s.append(fW2.T); b2s.append(fb2[:, None])
        w3s.append(fW3.T); b3s.append(fb3[:, None])

    return (jnp.stack(w1s), jnp.stack(b1s), jnp.stack(w2s),
            jnp.stack(b2s), jnp.stack(w3s), jnp.stack(b3s))


# ------------------------- parameter init (deterministic) -------------------------
def init_params(key):
    def linear(k, fan_in, fan_out):
        k1, k2 = jax.random.split(k)
        bound = 1.0 / math.sqrt(fan_in)
        W = jax.random.uniform(k1, (fan_in, fan_out), jnp.float32, -bound, bound)
        b = jax.random.uniform(k2, (fan_out,), jnp.float32, -bound, bound)
        return W, b

    def stack_net(k):
        Ws1, bs1, Ws2, bs2, Ws3, bs3 = [], [], [], [], [], []
        for _ in range(NUM_FLOWS):
            k, k1, k2, k3 = jax.random.split(k, 4)
            W1, b1 = linear(k1, D_HALF, HIDDEN)
            W2, b2 = linear(k2, HIDDEN, HIDDEN)
            W3, b3 = linear(k3, HIDDEN, D_HALF)
            Ws1.append(W1); bs1.append(b1)
            Ws2.append(W2); bs2.append(b2)
            Ws3.append(W3); bs3.append(b3)
        return (jnp.stack(Ws1), jnp.stack(bs1), jnp.stack(Ws2),
                jnp.stack(bs2), jnp.stack(Ws3), jnp.stack(bs3)), k

    key, kx = jax.random.split(key)
    s_stacks, key = stack_net(key)
    t_stacks, key = stack_net(key)
    return kx, s_stacks + t_stacks


# ------------------------- pure-JAX reference (original formulation) -------------------------
def _mlp_ref(x, W1, b1, W2, b2, W3, b3, final_tanh):
    h = _leaky_relu(x @ W1 + b1)
    h = _leaky_relu(h @ W2 + b2)
    o = h @ W3 + b3
    return jnp.tanh(o) if final_tanh else o


def realnvp_reference(x, raw, reduction="avg"):
    (sW1, sb1, sW2, sb2, sW3, sb3,
     tW1, tb1, tW2, tb2, tW3, tb3) = raw
    z = x.astype(jnp.float32)
    log_det = jnp.zeros((x.shape[0],), jnp.float32)
    for i in range(NUM_FLOWS):
        xa, xb = z[:, :D_HALF], z[:, D_HALF:]
        s = _mlp_ref(xa, sW1[i], sb1[i][None], sW2[i], sb2[i][None],
                     sW3[i], sb3[i][None], True)
        t = _mlp_ref(xa, tW1[i], tb1[i][None], tW2[i], tb2[i][None],
                     tW3[i], tb3[i][None], False)
        yb = (xb - t) * jnp.exp(-s)
        z = jnp.concatenate([xa, yb], axis=1)[:, ::-1]     # coupling + flip(1)
        log_det = log_det - jnp.sum(s, axis=1)
    logp = -0.5 * D * LOG_2PI - 0.5 * jnp.sum(z * z, axis=1)
    nll = -(logp + log_det)
    return jnp.mean(nll) if reduction == "avg" else jnp.sum(nll)


if __name__ == "__main__":
    key = jax.random.PRNGKey(0)
    kx, raw_params = init_params(key)
    kernel_params = prepare_kernel_params(raw_params)

    B = 16
    x = jax.random.normal(kx, (B, D), jnp.float32)

    loss = jax.block_until_ready(realnvp_forward(x, kernel_params, reduction="avg"))
    ref = jax.block_until_ready(realnvp_reference(x, raw_params, reduction="avg"))
    assert jnp.allclose(loss, ref, rtol=1e-4, atol=1e-4), (loss, ref)

    # TODO(synk): f_inv / sample (inverse flow) are not part of forward() and are not kernelized.
    print("KERNEL_OK")
</pallas_src>

<mosaic_0001>
module attributes {stable_mosaic.version = 11 : i64} {
  func.func @realnvp_kernel(%arg0: i32, %arg1: memref<2x16xf32, #tpu.memory_space<vmem>>, %arg2: memref<2x16xf32, #tpu.memory_space<vmem>>, %arg3: memref<4x64x2xf32, #tpu.memory_space<vmem>>, %arg4: memref<4x64x1xf32, #tpu.memory_space<vmem>>, %arg5: memref<4x64x64xf32, #tpu.memory_space<vmem>>, %arg6: memref<4x64x1xf32, #tpu.memory_space<vmem>>, %arg7: memref<4x4x64xf32, #tpu.memory_space<vmem>>, %arg8: memref<4x4x1xf32, #tpu.memory_space<vmem>>, %arg9: memref<1x1xf32, #tpu.memory_space<vmem>>) attributes {dimension_semantics = [#tpu.dimension_semantics<parallel>], iteration_bounds = array<i64: 1>, scalar_prefetch = 0 : i64, scratch_operands = 0 : i64, tpu.core_type = #tpu.core_type<tc>, window_params = [{transform_indices = @transform_0, window_bounds = array<i64: 2, 16>}, {transform_indices = @transform_1, window_bounds = array<i64: 2, 16>}, {pipeline_mode = #tpu.pipeline_mode<synchronous>, transform_indices = @transform_2, window_bounds = array<i64: 4, 64, 2>}, {pipeline_mode = #tpu.pipeline_mode<synchronous>, transform_indices = @transform_3, window_bounds = array<i64: 4, 64, 1>}, {pipeline_mode = #tpu.pipeline_mode<synchronous>, transform_indices = @transform_4, window_bounds = array<i64: 4, 64, 64>}, {pipeline_mode = #tpu.pipeline_mode<synchronous>, transform_indices = @transform_5, window_bounds = array<i64: 4, 64, 1>}, {pipeline_mode = #tpu.pipeline_mode<synchronous>, transform_indices = @transform_6, window_bounds = array<i64: 4, 4, 64>}, {pipeline_mode = #tpu.pipeline_mode<synchronous>, transform_indices = @transform_7, window_bounds = array<i64: 4, 4, 1>}, {transform_indices = @transform_8, window_bounds = array<i64: 1, 1>}]} {
    %c0 = arith.constant 0 : index
    %c0_0 = arith.constant 0 : index
    %0 = vector.load %arg1[%c0, %c0_0] : memref<2x16xf32, #tpu.memory_space<vmem>>, vector<2x16xf32>
    %c0_1 = arith.constant 0 : index
    %c0_2 = arith.constant 0 : index
    %1 = vector.load %arg2[%c0_1, %c0_2] : memref<2x16xf32, #tpu.memory_space<vmem>>, vector<2x16xf32>
    %cst = arith.constant 0.000000e+00 : f32
    %2 = vector.broadcast %cst : f32 to vector<1x16xf32>
    %c0_3 = arith.constant 0 : index
    %c0_4 = arith.constant 0 : index
    %c0_5 = arith.constant 0 : index
    %3 = vector.load %arg3[%c0_3, %c0_4, %c0_5] : memref<4x64x2xf32, #tpu.memory_space<vmem>>, vector<1x64x2xf32>
    %4 = vector.shape_cast %3 : vector<1x64x2xf32> to vector<64x2xf32>
    %cst_6 = arith.constant dense<0.000000e+00> : vector<64x16xf32>
    %5 = tpu.matmul %4, %0, %cst_6 {dimension_numbers = #tpu.dot_dimension_numbers<[1], [0], [0], [1], [0, 0, 1, 1], [], []>} : vector<64x2xf32>, vector<2x16xf32>, vector<64x16xf32> -> vector<64x16xf32>
    %c0_7 = arith.constant 0 : index
    %c0_8 = arith.constant 0 : index
    %c0_9 = arith.constant 0 : index
    %6 = vector.load %arg4[%c0_7, %c0_8, %c0_9] : memref<4x64x1xf32, #tpu.memory_space<vmem>>, vector<1x64x1xf32>
    %7 = vector.shape_cast %6 : vector<1x64x1xf32> to vector<64x1xf32>
    %8 = vector.broadcast %7 : vector<64x1xf32> to vector<64x16xf32>
    %9 = arith.addf %5, %8 : vector<64x16xf32>
    %cst_10 = arith.constant 0.000000e+00 : f32
    %10 = vector.broadcast %cst_10 : f32 to vector<64x16xf32>
    %11 = arith.cmpf ogt, %9, %10 : vector<64x16xf32>
    %cst_11 = arith.constant 0.00999999977 : f32
    %12 = vector.broadcast %cst_11 : f32 to vector<64x16xf32>
    %13 = arith.mulf %12, %9 : vector<64x16xf32>
    %14 = arith.select %11, %9, %13 : vector<64x16xi1>, vector<64x16xf32>
    %c0_12 = arith.constant 0 : index
    %c0_13 = arith.constant 0 : index
    %c0_14 = arith.constant 0 : index
    %15 = vector.load %arg5[%c0_12, %c0_13, %c0_14] : memref<4x64x64xf32, #tpu.memory_space<vmem>>, vector<1x64x64xf32>
    %16 = vector.shape_cast %15 : vector<1x64x64xf32> to vector<64x64xf32>
    %cst_15 = arith.constant dense<0.000000e+00> : vector<64x16xf32>
    %17 = tpu.matmul %16, %14, %cst_15 {dimension_numbers = #tpu.dot_dimension_numbers<[1], [0], [0], [1], [0, 0, 1, 1], [], []>} : vector<64x64xf32>, vector<64x16xf32>, vector<64x16xf32> -> vector<64x16xf32>
    %c0_16 = arith.constant 0 : index
    %c0_17 = arith.constant 0 : index
    %c0_18 = arith.constant 0 : index
    %18 = vector.load %arg6[%c0_16, %c0_17, %c0_18] : memref<4x64x1xf32, #tpu.memory_space<vmem>>, vector<1x64x1xf32>
    %19 = vector.shape_cast %18 : vector<1x64x1xf32> to vector<64x1xf32>
    %20 = vector.broadcast %19 : vector<64x1xf32> to vector<64x16xf32>
    %21 = arith.addf %17, %20 : vector<64x16xf32>
    %cst_19 = arith.constant 0.000000e+00 : f32
    %22 = vector.broadcast %cst_19 : f32 to vector<64x16xf32>
    %23 = arith.cmpf ogt, %21, %22 : vector<64x16xf32>
    %cst_20 = arith.constant 0.00999999977 : f32
    %24 = vector.broadcast %cst_20 : f32 to vector<64x16xf32>
    %25 = arith.mulf %24, %21 : vector<64x16xf32>
    %26 = arith.select %23, %21, %25 : vector<64x16xi1>, vector<64x16xf32>
    %c0_21 = arith.constant 0 : index
    %c0_22 = arith.constant 0 : index
    %c0_23 = arith.constant 0 : index
    %27 = vector.load %arg7[%c0_21, %c0_22, %c0_23] : memref<4x4x64xf32, #tpu.memory_space<vmem>>, vector<1x4x64xf32>
    %28 = vector.shape_cast %27 : vector<1x4x64xf32> to vector<4x64xf32>
    %cst_24 = arith.constant dense<0.000000e+00> : vector<4x16xf32>
    %29 = tpu.matmul %28, %26, %cst_24 {dimension_numbers = #tpu.dot_dimension_numbers<[1], [0], [0], [1], [0, 0, 1, 1], [], []>} : vector<4x64xf32>, vector<64x16xf32>, vector<4x16xf32> -> vector<4x16xf32>
    %c0_25 = arith.constant 0 : index
    %c0_26 = arith.constant 0 : index
    %c0_27 = arith.constant 0 : index
    %30 = vector.load %arg8[%c0_25, %c0_26, %c0_27] : memref<4x4x1xf32, #tpu.memory_space<vmem>>, vector<1x4x1xf32>
    %31 = vector.shape_cast %30 : vector<1x4x1xf32> to vector<4x1xf32>
    %32 = vector.broadcast %31 : vector<4x1xf32> to vector<4x16xf32>
    %33 = arith.addf %29, %32 : vector<4x16xf32>
    %34 = vector.extract_strided_slice %33 {offsets = [0, 0], sizes = [2, 16], strides = [1, 1]} : vector<4x16xf32> to vector<2x16xf32>
    %35 = math.tanh %34 : vector<2x16xf32>
    %36 = vector.extract_strided_slice %33 {offsets = [2, 0], sizes = [2, 16], strides = [1, 1]} : vector<4x16xf32> to vector<2x16xf32>
    %37 = arith.subf %1, %36 : vector<2x16xf32>
    %cst_28 = arith.constant 0.000000e+00 : f32
    %38 = vector.broadcast %cst_28 : f32 to vector<2x16xf32>
    %39 = arith.subf %38, %35 : vector<2x16xf32>
    %40 = math.exp %39 : vector<2x16xf32>
    %41 = arith.mulf %37, %40 : vector<2x16xf32>
    %cst_29 = arith.constant dense<0.000000e+00> : vector<16xf32>
    %42 = vector.multi_reduction <add>, %35, %cst_29 [0] : vector<2x16xf32> to vector<16xf32>
    %43 = vector.shape_cast %42 : vector<16xf32> to vector<1x16xf32>
    %44 = arith.subf %2, %43 : vector<1x16xf32>
    %c1 = arith.constant 1 : index
    %c0_30 = arith.constant 0 : index
    %c0_31 = arith.constant 0 : index
    %45 = vector.load %arg3[%c1, %c0_30, %c0_31] : memref<4x64x2xf32, #tpu.memory_space<vmem>>, vector<1x64x2xf32>
    %46 = vector.shape_cast %45 : vector<1x64x2xf32> to vector<64x2xf32>
    %cst_32 = arith.constant dense<0.000000e+00> : vector<64x16xf32>
    %47 = tpu.matmul %46, %41, %cst_32 {dimension_numbers = #tpu.dot_dimension_numbers<[1], [0], [0], [1], [0, 0, 1, 1], [], []>} : vector<64x2xf32>, vector<2x16xf32>, vector<64x16xf32> -> vector<64x16xf32>
    %c1_33 = arith.constant 1 : index
    %c0_34 = arith.constant 0 : index
    %c0_35 = arith.constant 0 : index
    %48 = vector.load %arg4[%c1_33, %c0_34, %c0_35] : memref<4x64x1xf32, #tpu.memory_space<vmem>>, vector<1x64x1xf32>
    %49 = vector.shape_cast %48 : vector<1x64x1xf32> to vector<64x1xf32>
    %50 = vector.broadcast %49 : vector<64x1xf32> to vector<64x16xf32>
    %51 = arith.addf %47, %50 : vector<64x16xf32>
    %cst_36 = arith.constant 0.000000e+00 : f32
    %52 = vector.broadcast %cst_36 : f32 to vector<64x16xf32>
    %53 = arith.cmpf ogt, %51, %52 : vector<64x16xf32>
    %cst_37 = arith.constant 0.00999999977 : f32
    %54 = vector.broadcast %cst_37 : f32 to vector<64x16xf32>
    %55 = arith.mulf %54, %51 : vector<64x16xf32>
    %56 = arith.select %53, %51, %55 : vector<64x16xi1>, vector<64x16xf32>
    %c1_38 = arith.constant 1 : index
    %c0_39 = arith.constant 0 : index
    %c0_40 = arith.constant 0 : index
    %57 = vector.load %arg5[%c1_38, %c0_39, %c0_40] : memref<4x64x64xf32, #tpu.memory_space<vmem>>, vector<1x64x64xf32>
    %58 = vector.shape_cast %57 : vector<1x64x64xf32> to vector<64x64xf32>
    %cst_41 = arith.constant dense<0.000000e+00> : vector<64x16xf32>
    %59 = tpu.matmul %58, %56, %cst_41 {dimension_numbers = #tpu.dot_dimension_numbers<[1], [0], [0], [1], [0, 0, 1, 1], [], []>} : vector<64x64xf32>, vector<64x16xf32>, vector<64x16xf32> -> vector<64x16xf32>
    %c1_42 = arith.constant 1 : index
    %c0_43 = arith.constant 0 : index
    %c0_44 = arith.constant 0 : index
    %60 = vector.load %arg6[%c1_42, %c0_43, %c0_44] : memref<4x64x1xf32, #tpu.memory_space<vmem>>, vector<1x64x1xf32>
    %61 = vector.shape_cast %60 : vector<1x64x1xf32> to vector<64x1xf32>
    %62 = vector.broadcast %61 : vector<64x1xf32> to vector<64x16xf32>
    %63 = arith.addf %59, %62 : vector<64x16xf32>
    %cst_45 = arith.constant 0.000000e+00 : f32
    %64 = vector.broadcast %cst_45 : f32 to vector<64x16xf32>
    %65 = arith.cmpf ogt, %63, %64 : vector<64x16xf32>
    %cst_46 = arith.constant 0.00999999977 : f32
    %66 = vector.broadcast %cst_46 : f32 to vector<64x16xf32>
    %67 = arith.mulf %66, %63 : vector<64x16xf32>
    %68 = arith.select %65, %63, %67 : vector<64x16xi1>, vector<64x16xf32>
    %c1_47 = arith.constant 1 : index
    %c0_48 = arith.constant 0 : index
    %c0_49 = arith.constant 0 : index
    %69 = vector.load %arg7[%c1_47, %c0_48, %c0_49] : memref<4x4x64xf32, #tpu.memory_space<vmem>>, vector<1x4x64xf32>
    %70 = vector.shape_cast %69 : vector<1x4x64xf32> to vector<4x64xf32>
    %cst_50 = arith.constant dense<0.000000e+00> : vector<4x16xf32>
    %71 = tpu.matmul %70, %68, %cst_50 {dimension_numbers = #tpu.dot_dimension_numbers<[1], [0], [0], [1], [0, 0, 1, 1], [], []>} : vector<4x64xf32>, vector<64x16xf32>, vector<4x16xf32> -> vector<4x16xf32>
    %c1_51 = arith.constant 1 : index
    %c0_52 = arith.constant 0 : index
    %c0_53 = arith.constant 0 : index
    %72 = vector.load %arg8[%c1_51, %c0_52, %c0_53] : memref<4x4x1xf32, #tpu.memory_space<vmem>>, vector<1x4x1xf32>
    %73 = vector.shape_cast %72 : vector<1x4x1xf32> to vector<4x1xf32>
    %74 = vector.broadcast %73 : vector<4x1xf32> to vector<4x16xf32>
    %75 = arith.addf %71, %74 : vector<4x16xf32>
    %76 = vector.extract_strided_slice %75 {offsets = [0, 0], sizes = [2, 16], strides = [1, 1]} : vector<4x16xf32> to vector<2x16xf32>
    %77 = math.tanh %76 : vector<2x16xf32>
    %78 = vector.extract_strided_slice %75 {offsets = [2, 0], sizes = [2, 16], strides = [1, 1]} : vector<4x16xf32> to vector<2x16xf32>
    %79 = arith.subf %0, %78 : vector<2x16xf32>
    %cst_54 = arith.constant 0.000000e+00 : f32
    %80 = vector.broadcast %cst_54 : f32 to vector<2x16xf32>
    %81 = arith.subf %80, %77 : vector<2x16xf32>
    %82 = math.exp %81 : vector<2x16xf32>
    %83 = arith.mulf %79, %82 : vector<2x16xf32>
    %cst_55 = arith.constant dense<0.000000e+00> : vector<16xf32>
    %84 = vector.multi_reduction <add>, %77, %cst_55 [0] : vector<2x16xf32> to vector<16xf32>
    %85 = vector.shape_cast %84 : vector<16xf32> to vector<1x16xf32>
    %86 = arith.subf %44, %85 : vector<1x16xf32>
    %c2 = arith.constant 2 : index
    %c0_56 = arith.constant 0 : index
    %c0_57 = arith.constant 0 : index
    %87 = vector.load %arg3[%c2, %c0_56, %c0_57] : memref<4x64x2xf32, #tpu.memory_space<vmem>>, vector<1x64x2xf32>
    %88 = vector.shape_cast %87 : vector<1x64x2xf32> to vector<64x2xf32>
    %cst_58 = arith.constant dense<0.000000e+00> : vector<64x16xf32>
    %89 = tpu.matmul %88, %83, %cst_58 {dimension_numbers = #tpu.dot_dimension_numbers<[1], [0], [0], [1], [0, 0, 1, 1], [], []>} : vector<64x2xf32>, vector<2x16xf32>, vector<64x16xf32> -> vector<64x16xf32>
    %c2_59 = arith.constant 2 : index
    %c0_60 = arith.constant 0 : index
    %c0_61 = arith.constant 0 : index
    %90 = vector.load %arg4[%c2_59, %c0_60, %c0_61] : memref<4x64x1xf32, #tpu.memory_space<vmem>>, vector<1x64x1xf32>
    %91 = vector.shape_cast %90 : vector<1x64x1xf32> to vector<64x1xf32>
    %92 = vector.broadcast %91 : vector<64x1xf32> to vector<64x16xf32>
    %93 = arith.addf %89, %92 : vector<64x16xf32>
    %cst_62 = arith.constant 0.000000e+00 : f32
    %94 = vector.broadcast %cst_62 : f32 to vector<64x16xf32>
    %95 = arith.cmpf ogt, %93, %94 : vector<64x16xf32>
    %cst_63 = arith.constant 0.00999999977 : f32
    %96 = vector.broadcast %cst_63 : f32 to vector<64x16xf32>
    %97 = arith.mulf %96, %93 : vector<64x16xf32>
    %98 = arith.select %95, %93, %97 : vector<64x16xi1>, vector<64x16xf32>
    %c2_64 = arith.constant 2 : index
    %c0_65 = arith.constant 0 : index
    %c0_66 = arith.constant 0 : index
    %99 = vector.load %arg5[%c2_64, %c0_65, %c0_66] : memref<4x64x64xf32, #tpu.memory_space<vmem>>, vector<1x64x64xf32>
    %100 = vector.shape_cast %99 : vector<1x64x64xf32> to vector<64x64xf32>
    %cst_67 = arith.constant dense<0.000000e+00> : vector<64x16xf32>
    %101 = tpu.matmul %100, %98, %cst_67 {dimension_numbers = #tpu.dot_dimension_numbers<[1], [0], [0], [1], [0, 0, 1, 1], [], []>} : vector<64x64xf32>, vector<64x16xf32>, vector<64x16xf32> -> vector<64x16xf32>
    %c2_68 = arith.constant 2 : index
    %c0_69 = arith.constant 0 : index
    %c0_70 = arith.constant 0 : index
    %102 = vector.load %arg6[%c2_68, %c0_69, %c0_70] : memref<4x64x1xf32, #tpu.memory_space<vmem>>, vector<1x64x1xf32>
    %103 = vector.shape_cast %102 : vector<1x64x1xf32> to vector<64x1xf32>
    %104 = vector.broadcast %103 : vector<64x1xf32> to vector<64x16xf32>
    %105 = arith.addf %101, %104 : vector<64x16xf32>
    %cst_71 = arith.constant 0.000000e+00 : f32
    %106 = vector.broadcast %cst_71 : f32 to vector<64x16xf32>
    %107 = arith.cmpf ogt, %105, %106 : vector<64x16xf32>
    %cst_72 = arith.constant 0.00999999977 : f32
    %108 = vector.broadcast %cst_72 : f32 to vector<64x16xf32>
    %109 = arith.mulf %108, %105 : vector<64x16xf32>
    %110 = arith.select %107, %105, %109 : vector<64x16xi1>, vector<64x16xf32>
    %c2_73 = arith.constant 2 : index
    %c0_74 = arith.constant 0 : index
    %c0_75 = arith.constant 0 : index
    %111 = vector.load %arg7[%c2_73, %c0_74, %c0_75] : memref<4x4x64xf32, #tpu.memory_space<vmem>>, vector<1x4x64xf32>
    %112 = vector.shape_cast %111 : vector<1x4x64xf32> to vector<4x64xf32>
    %cst_76 = arith.constant dense<0.000000e+00> : vector<4x16xf32>
    %113 = tpu.matmul %112, %110, %cst_76 {dimension_numbers = #tpu.dot_dimension_numbers<[1], [0], [0], [1], [0, 0, 1, 1], [], []>} : vector<4x64xf32>, vector<64x16xf32>, vector<4x16xf32> -> vector<4x16xf32>
    %c2_77 = arith.constant 2 : index
    %c0_78 = arith.constant 0 : index
    %c0_79 = arith.constant 0 : index
    %114 = vector.load %arg8[%c2_77, %c0_78, %c0_79] : memref<4x4x1xf32, #tpu.memory_space<vmem>>, vector<1x4x1xf32>
    %115 = vector.shape_cast %114 : vector<1x4x1xf32> to vector<4x1xf32>
    %116 = vector.broadcast %115 : vector<4x1xf32> to vector<4x16xf32>
    %117 = arith.addf %113, %116 : vector<4x16xf32>
    %118 = vector.extract_strided_slice %117 {offsets = [0, 0], sizes = [2, 16], strides = [1, 1]} : vector<4x16xf32> to vector<2x16xf32>
    %119 = math.tanh %118 : vector<2x16xf32>
    %120 = vector.extract_strided_slice %117 {offsets = [2, 0], sizes = [2, 16], strides = [1, 1]} : vector<4x16xf32> to vector<2x16xf32>
    %121 = arith.subf %41, %120 : vector<2x16xf32>
    %cst_80 = arith.constant 0.000000e+00 : f32
    %122 = vector.broadcast %cst_80 : f32 to vector<2x16xf32>
    %123 = arith.subf %122, %119 : vector<2x16xf32>
    %124 = math.exp %123 : vector<2x16xf32>
    %125 = arith.mulf %121, %124 : vector<2x16xf32>
    %cst_81 = arith.constant dense<0.000000e+00> : vector<16xf32>
    %126 = vector.multi_reduction <add>, %119, %cst_81 [0] : vector<2x16xf32> to vector<16xf32>
    %127 = vector.shape_cast %126 : vector<16xf32> to vector<1x16xf32>
    %128 = arith.subf %86, %127 : vector<1x16xf32>
    %c3 = arith.constant 3 : index
    %c0_82 = arith.constant 0 : index
    %c0_83 = arith.constant 0 : index
    %129 = vector.load %arg3[%c3, %c0_82, %c0_83] : memref<4x64x2xf32, #tpu.memory_space<vmem>>, vector<1x64x2xf32>
    %130 = vector.shape_cast %129 : vector<1x64x2xf32> to vector<64x2xf32>
    %cst_84 = arith.constant dense<0.000000e+00> : vector<64x16xf32>
    %131 = tpu.matmul %130, %125, %cst_84 {dimension_numbers = #tpu.dot_dimension_numbers<[1], [0], [0], [1], [0, 0, 1, 1], [], []>} : vector<64x2xf32>, vector<2x16xf32>, vector<64x16xf32> -> vector<64x16xf32>
    %c3_85 = arith.constant 3 : index
    %c0_86 = arith.constant 0 : index
    %c0_87 = arith.constant 0 : index
    %132 = vector.load %arg4[%c3_85, %c0_86, %c0_87] : memref<4x64x1xf32, #tpu.memory_space<vmem>>, vector<1x64x1xf32>
    %133 = vector.shape_cast %132 : vector<1x64x1xf32> to vector<64x1xf32>
    %134 = vector.broadcast %133 : vector<64x1xf32> to vector<64x16xf32>
    %135 = arith.addf %131, %134 : vector<64x16xf32>
    %cst_88 = arith.constant 0.000000e+00 : f32
    %136 = vector.broadcast %cst_88 : f32 to vector<64x16xf32>
    %137 = arith.cmpf ogt, %135, %136 : vector<64x16xf32>
    %cst_89 = arith.constant 0.00999999977 : f32
    %138 = vector.broadcast %cst_89 : f32 to vector<64x16xf32>
    %139 = arith.mulf %138, %135 : vector<64x16xf32>
    %140 = arith.select %137, %135, %139 : vector<64x16xi1>, vector<64x16xf32>
    %c3_90 = arith.constant 3 : index
    %c0_91 = arith.constant 0 : index
    %c0_92 = arith.constant 0 : index
    %141 = vector.load %arg5[%c3_90, %c0_91, %c0_92] : memref<4x64x64xf32, #tpu.memory_space<vmem>>, vector<1x64x64xf32>
    %142 = vector.shape_cast %141 : vector<1x64x64xf32> to vector<64x64xf32>
    %cst_93 = arith.constant dense<0.000000e+00> : vector<64x16xf32>
    %143 = tpu.matmul %142, %140, %cst_93 {dimension_numbers = #tpu.dot_dimension_numbers<[1], [0], [0], [1], [0, 0, 1, 1], [], []>} : vector<64x64xf32>, vector<64x16xf32>, vector<64x16xf32> -> vector<64x16xf32>
    %c3_94 = arith.constant 3 : index
    %c0_95 = arith.constant 0 : index
    %c0_96 = arith.constant 0 : index
    %144 = vector.load %arg6[%c3_94, %c0_95, %c0_96] : memref<4x64x1xf32, #tpu.memory_space<vmem>>, vector<1x64x1xf32>
    %145 = vector.shape_cast %144 : vector<1x64x1xf32> to vector<64x1xf32>
    %146 = vector.broadcast %145 : vector<64x1xf32> to vector<64x16xf32>
    %147 = arith.addf %143, %146 : vector<64x16xf32>
    %cst_97 = arith.constant 0.000000e+00 : f32
    %148 = vector.broadcast %cst_97 : f32 to vector<64x16xf32>
    %149 = arith.cmpf ogt, %147, %148 : vector<64x16xf32>
    %cst_98 = arith.constant 0.00999999977 : f32
    %150 = vector.broadcast %cst_98 : f32 to vector<64x16xf32>
    %151 = arith.mulf %150, %147 : vector<64x16xf32>
    %152 = arith.select %149, %147, %151 : vector<64x16xi1>, vector<64x16xf32>
    %c3_99 = arith.constant 3 : index
    %c0_100 = arith.constant 0 : index
    %c0_101 = arith.constant 0 : index
    %153 = vector.load %arg7[%c3_99, %c0_100, %c0_101] : memref<4x4x64xf32, #tpu.memory_space<vmem>>, vector<1x4x64xf32>
    %154 = vector.shape_cast %153 : vector<1x4x64xf32> to vector<4x64xf32>
    %cst_102 = arith.constant dense<0.000000e+00> : vector<4x16xf32>
    %155 = tpu.matmul %154, %152, %cst_102 {dimension_numbers = #tpu.dot_dimension_numbers<[1], [0], [0], [1], [0, 0, 1, 1], [], []>} : vector<4x64xf32>, vector<64x16xf32>, vector<4x16xf32> -> vector<4x16xf32>
    %c3_103 = arith.constant 3 : index
    %c0_104 = arith.constant 0 : index
    %c0_105 = arith.constant 0 : index
    %156 = vector.load %arg8[%c3_103, %c0_104, %c0_105] : memref<4x4x1xf32, #tpu.memory_space<vmem>>, vector<1x4x1xf32>
    %157 = vector.shape_cast %156 : vector<1x4x1xf32> to vector<4x1xf32>
    %158 = vector.broadcast %157 : vector<4x1xf32> to vector<4x16xf32>
    %159 = arith.addf %155, %158 : vector<4x16xf32>
    %160 = vector.extract_strided_slice %159 {offsets = [0, 0], sizes = [2, 16], strides = [1, 1]} : vector<4x16xf32> to vector<2x16xf32>
    %161 = math.tanh %160 : vector<2x16xf32>
    %162 = vector.extract_strided_slice %159 {offsets = [2, 0], sizes = [2, 16], strides = [1, 1]} : vector<4x16xf32> to vector<2x16xf32>
    %163 = arith.subf %83, %162 : vector<2x16xf32>
    %cst_106 = arith.constant 0.000000e+00 : f32
    %164 = vector.broadcast %cst_106 : f32 to vector<2x16xf32>
    %165 = arith.subf %164, %161 : vector<2x16xf32>
    %166 = math.exp %165 : vector<2x16xf32>
    %167 = arith.mulf %163, %166 : vector<2x16xf32>
    %cst_107 = arith.constant dense<0.000000e+00> : vector<16xf32>
    %168 = vector.multi_reduction <add>, %161, %cst_107 [0] : vector<2x16xf32> to vector<16xf32>
    %169 = vector.shape_cast %168 : vector<16xf32> to vector<1x16xf32>
    %170 = arith.subf %128, %169 : vector<1x16xf32>
    %171 = arith.mulf %167, %167 : vector<2x16xf32>
    %cst_108 = arith.constant dense<0.000000e+00> : vector<16xf32>
    %172 = vector.multi_reduction <add>, %171, %cst_108 [0] : vector<2x16xf32> to vector<16xf32>
    %173 = vector.shape_cast %172 : vector<16xf32> to vector<1x16xf32>
    %174 = arith.mulf %125, %125 : vector<2x16xf32>
    %cst_109 = arith.constant dense<0.000000e+00> : vector<16xf32>
    %175 = vector.multi_reduction <add>, %174, %cst_109 [0] : vector<2x16xf32> to vector<16xf32>
    %176 = vector.shape_cast %175 : vector<16xf32> to vector<1x16xf32>
    %177 = arith.addf %173, %176 : vector<1x16xf32>
    %cst_110 = arith.constant 5.000000e-01 : f32
    %178 = vector.broadcast %cst_110 : f32 to vector<1x16xf32>
    %179 = arith.mulf %178, %177 : vector<1x16xf32>
    %cst_111 = arith.constant -3.67575407 : f32
    %180 = vector.broadcast %cst_111 : f32 to vector<1x16xf32>
    %181 = arith.subf %180, %179 : vector<1x16xf32>
    %182 = arith.addf %181, %170 : vector<1x16xf32>
    %cst_112 = arith.constant dense<0.000000e+00> : vector<1xf32>
    %183 = vector.multi_reduction <add>, %182, %cst_112 [1] : vector<1x16xf32> to vector<1xf32>
    %184 = vector.shape_cast %183 : vector<1xf32> to vector<1x1xf32>
    %cst_113 = arith.constant 0.000000e+00 : f32
    %185 = vector.broadcast %cst_113 : f32 to vector<1x1xf32>
    %186 = arith.subf %185, %184 : vector<1x1xf32>
    %c0_114 = arith.constant 0 : index
    %c0_115 = arith.constant 0 : index
    %187 = vector.load %arg9[%c0_114, %c0_115] : memref<1x1xf32, #tpu.memory_space<vmem>>, vector<1x1xf32>
    tpu.vector_store %arg9[%c0_114, %c0_115], %186 {strides = array<i32>} : memref<1x1xf32, #tpu.memory_space<vmem>>, vector<1x1xf32>,
    return
  }
  func.func @transform_0(%arg0: i32) -> (i32, i32) {
    %c0_i32 = arith.constant 0 : i32
    %c0_i32_0 = arith.constant 0 : i32
    return %c0_i32, %arg0 : i32, i32
  }
  func.func @transform_1(%arg0: i32) -> (i32, i32) {
    %c0_i32 = arith.constant 0 : i32
    %c0_i32_0 = arith.constant 0 : i32
    return %c0_i32, %arg0 : i32, i32
  }
  func.func @transform_2(%arg0: i32) -> (i32, i32, i32) {
    %c0_i32 = arith.constant 0 : i32
    %c0_i32_0 = arith.constant 0 : i32
    %c0_i32_1 = arith.constant 0 : i32
    %c0_i32_2 = arith.constant 0 : i32
    return %c0_i32, %c0_i32_0, %c0_i32_1 : i32, i32, i32
  }
  func.func @transform_3(%arg0: i32) -> (i32, i32, i32) {
    %c0_i32 = arith.constant 0 : i32
    %c0_i32_0 = arith.constant 0 : i32
    %c0_i32_1 = arith.constant 0 : i32
    %c0_i32_2 = arith.constant 0 : i32
    return %c0_i32, %c0_i32_0, %c0_i32_1 : i32, i32, i32
  }
  func.func @transform_4(%arg0: i32) -> (i32, i32, i32) {
    %c0_i32 = arith.constant 0 : i32
    %c0_i32_0 = arith.constant 0 : i32
    %c0_i32_1 = arith.constant 0 : i32
    %c0_i32_2 = arith.constant 0 : i32
    return %c0_i32, %c0_i32_0, %c0_i32_1 : i32, i32, i32
  }
  func.func @transform_5(%arg0: i32) -> (i32, i32, i32) {
    %c0_i32 = arith.constant 0 : i32
    %c0_i32_0 = arith.constant 0 : i32
    %c0_i32_1 = arith.constant 0 : i32
    %c0_i32_2 = arith.constant 0 : i32
    return %c0_i32, %c0_i32_0, %c0_i32_1 : i32, i32, i32
  }
  func.func @transform_6(%arg0: i32) -> (i32, i32, i32) {
    %c0_i32 = arith.constant 0 : i32
    %c0_i32_0 = arith.constant 0 : i32
    %c0_i32_1 = arith.constant 0 : i32
    %c0_i32_2 = arith.constant 0 : i32
    return %c0_i32, %c0_i32_0, %c0_i32_1 : i32, i32, i32
  }
  func.func @transform_7(%arg0: i32) -> (i32, i32, i32) {
    %c0_i32 = arith.constant 0 : i32
    %c0_i32_0 = arith.constant 0 : i32
    %c0_i32_1 = arith.constant 0 : i32
    %c0_i32_2 = arith.constant 0 : i32
    return %c0_i32, %c0_i32_0, %c0_i32_1 : i32, i32, i32
  }
  func.func @transform_8(%arg0: i32) -> (i32, i32) {
    %c0_i32 = arith.constant 0 : i32
    %c0_i32_0 = arith.constant 0 : i32
    return %arg0, %c0_i32 : i32, i32
  }
}

</mosaic_0001>

<bundles_post_ra>
// kernel: tpu_custom_call.1
= control target key start
LH: loop header
LB: loop body
LE: loop exit
PB: predicated region body
PF: predicated region fallthrough
CT: control target
= control target key end

     0   :  { %vm113_vm0 = vcmask 1041408   ;;  %v2880_v3 = vmov 0   ;;  %vm88_vm1 = vcmask 15360   ;;  %s3496_s0 = inlined_call_operand.vmem [shape: f32[2,16], index: 0, kind: input, shape index: {}]   ;;  %s3497_s1 = inlined_call_operand.vmem [shape: f32[2,16], index: 1, kind: input, shape index: {}]   ;;  %s3498_s2 = inlined_call_operand.vmem [shape: f32[4,64,2], index: 2, kind: input, shape index: {}]   ;;  %s3499_s3 = inlined_call_operand.vmem [shape: f32[4,64,1], index: 3, kind: input, shape index: {}]   ;;  %s3500_s4 = inlined_call_operand.vmem [shape: f32[4,64,64], index: 4, kind: input, shape index: {}]   ;;  %s3501_s5 = inlined_call_operand.vmem [shape: f32[4,64,1], index: 5, kind: input, shape index: {}]   ;;  %s3502_s6 = inlined_call_operand.vmem [shape: f32[4,4,64], index: 6, kind: input, shape index: {}]   ;;  %s3503_s7 = inlined_call_operand.vmem [shape: f32[4,4,1], index: 7, kind: input, shape index: {}]   ;;  %s3504_s8 = inlined_call_operand.hbm [shape: f32[1,1], index: 8, kind: output, shape index: {}]  }
   0x1   :  { %v2933_v0 = vld [vmem:[%s3496_s0] sm:$0x3]  ;;  %v42_v1 = vld [vmem:[%s3499_s3 + $0x10] sm:$0xff]  ;;  %2839 = vset.pattern.permute.xlu1 %v2880_v3  ;;  %2838 = vset.pattern.permute.xlu0 %v2880_v3  ;;  %v33_v5 = vld [vmem:[%s3498_s2 + $0x8] sm:$0xff] }
   0x2   :  { %v40_v2 = vld [vmem:[%s3499_s3] sm:$0xff]  ;;  %2477 = vmatprep.subr.msk.mxu0 %vm113_vm0, %v2933_v0  ;;  %60 = vperm.xlu1 %2839, %v42_v1   ;;  %v43_v6 = vld [vmem:[%s3499_s3 + $0x18] sm:$0xff]  ;;  %v34_v7 = vld [vmem:[%s3498_s2 + $0x10] sm:$0xff] }
   0x3   :  { %v32_v4 = vld [vmem:[%s3498_s2] sm:$0xff]  ;;  %50 = vperm.xlu0 %2838, %v40_v2   ;;  %2478 = vmatpush3.msk.msra.mxu0 %vm113_vm0, %v2933_v0  ;;  %v41_v8 = vld [vmem:[%s3499_s3 + $0x8] sm:$0xff]  ;;  %v35_v9 = vld [vmem:[%s3498_s2 + $0x18] sm:$0xff] }
   0x4   :  { %2479 = vmatprep.mubr.msk.f32.mxu0 %vm88_vm1, %v32_v4  ;;  %v45_v10 = vld [vmem:[%s3499_s3 + $0x28] sm:$0xff]  ;;  %v36_v11 = vld [vmem:[%s3498_s2 + $0x20] sm:$0xff]  ;;  %v47_v14 = vld [vmem:[%s3499_s3 + $0x38] sm:$0xff] }
   0x5   :  { %2480 = vmatmul.mubr.msk.f32.vlgmr.msra.gmra.mrb[0].mxu0 %vm88_vm1, %v33_v5  ;;  %v44_v12 = vld [vmem:[%s3499_s3 + $0x20] sm:$0xff]  ;;  %v37_v13 = vld [vmem:[%s3498_s2 + $0x28] sm:$0xff]  ;;  %v38_v15 = vld [vmem:[%s3498_s2 + $0x30] sm:$0xff] }
   0x6   :  { %65 = vperm.xlu1 %2839, %v43_v6   ;;  %2482 = vmatprep.mubr.msk.f32.mxu0 %vm88_vm1, %v34_v7  ;;  %v46_v16 = vld [vmem:[%s3499_s3 + $0x30] sm:$0xff]  ;;  %v39_v17 = vld [vmem:[%s3498_s2 + $0x38] sm:$0xff]  ;;  %v255_v18 = vld [vmem:[%s3501_s5 + $0x8] sm:$0xff] }
   0x7   :  { %55 = vperm.xlu0 %2838, %v41_v8   ;;  %v254_v19 = vld [vmem:[%s3501_s5] sm:$0xff]  ;;  %v257_v20 = vld [vmem:[%s3501_s5 + $0x18] sm:$0xff]  ;;  %v256_v21 = vld [vmem:[%s3501_s5 + $0x10] sm:$0xff] }
   0x8   :  { %v259_v22 = vld [vmem:[%s3501_s5 + $0x28] sm:$0xff]  ;;  %v258_v23 = vld [vmem:[%s3501_s5 + $0x20] sm:$0xff] }
   0x9   :  { %2483 = vmatmul.mubr.msk.f32.gmra.mrb[2].mxu0 %vm88_vm1, %v35_v9 }
   0xa   :  { %75 = vperm.xlu1 %2839, %v45_v10   ;;  %2485 = vmatprep.mubr.msk.f32.mxu0 %vm88_vm1, %v36_v11 }
   0xb   :  { %70 = vperm.xlu0 %2838, %v44_v12  }
   0xd   :  { %2486 = vmatmul.mubr.msk.f32.gmra.mrb[4].mxu0 %vm88_vm1, %v37_v13 }
   0xe   :  { %85 = vperm.xlu1 %2839, %v47_v14   ;;  %2488 = vmatprep.mubr.msk.f32.mxu0 %vm88_vm1, %v38_v15 }
   0xf   :  { %80 = vperm.xlu0 %2838, %v46_v16  }
  0x11   :  { %2489 = vmatmul.mubr.msk.f32.gmra.mrb[6].mxu0 %vm88_vm1, %v39_v17 }
  0x12   :  { %269 = vperm.xlu1 %2839, %v255_v18  }
  0x13   :  { %264 = vperm.xlu0 %2838, %v254_v19  }
  0x16   :  { %279 = vperm.xlu1 %2839, %v257_v20  }
  0x17   :  { %274 = vperm.xlu0 %2838, %v256_v21  }
  0x18   :  { %13 = vsyncpa [#allocation3], 0  ;;  %v261_v24 = vld [vmem:[%s3501_s5 + $0x38] sm:$0xff]  ;;  %v260_v25 = vld [vmem:[%s3501_s5 + $0x30] sm:$0xff]  ;;  %vm302_vm2 = vcmask 523264   ;;  %vm2882_vm11 = vmmov 0  }
  0x19   :  { %v2193_v26 = vld [vmem:[%s3499_s3 + $0x40] sm:$0xff]  ;;  %v2195_v28 = vld [vmem:[%s3499_s3 + $0x50] sm:$0xff]  ;;  %v2194_v29 = vld [vmem:[%s3499_s3 + $0x48] sm:$0xff] }
  0x1a   :  { %289 = vperm.xlu1 %2839, %v259_v22   ;;  %v457_v27 = vld [vmem:[%s3503_s7] sm:$0xf]  ;;  %v2196_v31 = vld [vmem:[%s3499_s3 + $0x58] sm:$0xff]  ;;  %v2199_v32 = vld [vmem:[%s3499_s3 + $0x70] sm:$0xff] }
  0x1b   :  { %284 = vperm.xlu0 %2838, %v258_v23   ;;  %v2197_v30 = vld [vmem:[%s3499_s3 + $0x60] sm:$0xff]  ;;  %v2198_v33 = vld [vmem:[%s3499_s3 + $0x68] sm:$0xff]  ;;  %v2200_v35 = vld [vmem:[%s3499_s3 + $0x78] sm:$0xff] }
  0x1c   :  { %v2218_v34 = vld [vmem:[%s3501_s5 + $0x40] sm:$0xff]  ;;  %v2220_v36 = vld [vmem:[%s3501_s5 + $0x50] sm:$0xff]  ;;  %v2219_v37 = vld [vmem:[%s3501_s5 + $0x48] sm:$0xff] }
  0x1d   :  { %v2222_v38 = vld [vmem:[%s3501_s5 + $0x60] sm:$0xff]  ;;  %v2221_v39 = vld [vmem:[%s3501_s5 + $0x58] sm:$0xff]  ;;  %v2224_v40 = vld [vmem:[%s3501_s5 + $0x70] sm:$0xff] }
  0x1e   :  { %299 = vperm.xlu1 %2839, %v261_v24   ;;  %v2223_v41 = vld [vmem:[%s3501_s5 + $0x68] sm:$0xff]  ;;  %v2235_v42 = vld [vmem:[%s3503_s7 + $0x4] sm:$0xf]  ;;  %v2225_v43 = vld [vmem:[%s3501_s5 + $0x78] sm:$0xff] }
  0x1f   :  { %294 = vperm.xlu0 %2838, %v260_v25   ;;  %v2246_v44 = vld [vmem:[%s3499_s3 + $0x88] sm:$0xff]  ;;  %v2245_v45 = vld [vmem:[%s3499_s3 + $0x80] sm:$0xff]  ;;  %v2248_v46 = vld [vmem:[%s3499_s3 + $0x98] sm:$0xff] }
  0x20   :  { %v2247_v47 = vld [vmem:[%s3499_s3 + $0x90] sm:$0xff]  ;;  %v2250_v48 = vld [vmem:[%s3499_s3 + $0xa8] sm:$0xff]  ;;  %v2249_v49 = vld [vmem:[%s3499_s3 + $0xa0] sm:$0xff] }
  0x21   :  { %v2252_v50 = vld [vmem:[%s3499_s3 + $0xb8] sm:$0xff]  ;;  %v2251_v51 = vld [vmem:[%s3499_s3 + $0xb0] sm:$0xff]  ;;  %v2271_v52 = vld [vmem:[%s3501_s5 + $0x88] sm:$0xff] }
  0x22   :  { %574 = vperm.xlu1 %2839, %v2193_v26   ;;  %v2270_v53 = vld [vmem:[%s3501_s5 + $0x80] sm:$0xff]  ;;  %v2273_v54 = vld [vmem:[%s3501_s5 + $0x98] sm:$0xff]  ;;  %v2272_v55 = vld [vmem:[%s3501_s5 + $0x90] sm:$0xff] }
  0x23   :  { %460 = vperm.xlu0 %2838, %v457_v27   ;;  %v2275_v56 = vld [vmem:[%s3501_s5 + $0xa8] sm:$0xff]  ;;  %v2274_v57 = vld [vmem:[%s3501_s5 + $0xa0] sm:$0xff]  ;;  %v2277_v58 = vld [vmem:[%s3501_s5 + $0xb8] sm:$0xff] }
  0x24   :  { %v2276_v59 = vld [vmem:[%s3501_s5 + $0xb0] sm:$0xff]  ;;  %v2297_v60 = vld [vmem:[%s3499_s3 + $0xc0] sm:$0xff]  ;;  %v2287_v61 = vld [vmem:[%s3503_s7 + $0x8] sm:$0xf] }
  0x25   :  { %v2299_v62 = vld [vmem:[%s3499_s3 + $0xd0] sm:$0xff]  ;;  %v2298_v63 = vld [vmem:[%s3499_s3 + $0xc8] sm:$0xff]  ;;  %v2301_v1 = vld [vmem:[%s3499_s3 + $0xe0] sm:$0xff] }
  0x26   :  { %584 = vperm.xlu1 %2839, %v2195_v28   ;;  %v2300_v2 = vld [vmem:[%s3499_s3 + $0xd8] sm:$0xff]  ;;  %v246_v3 = vld [vmem:[%s3500_s4] sm:$0xff]  ;;  %v2303_v4 = vld [vmem:[%s3499_s3 + $0xf0] sm:$0xff] }
  0x27   :  { %579 = vperm.xlu0 %2838, %v2194_v29   ;;  %2507 = vmatprep.mubr.msk.f32.mxu1 %vm302_vm2, %v246_v3  ;;  %v2302_v5 = vld [vmem:[%s3499_s3 + $0xe8] sm:$0xff]  ;;  %v2322_v6 = vld [vmem:[%s3501_s5 + $0xc0] sm:$0xff]  ;;  %v2304_v7 = vld [vmem:[%s3499_s3 + $0xf8] sm:$0xff] }
  0x28   :  { %v2324_v8 = vld [vmem:[%s3501_s5 + $0xd0] sm:$0xff]  ;;  %v2323_v9 = vld [vmem:[%s3501_s5 + $0xc8] sm:$0xff]  ;;  %v2326_v10 = vld [vmem:[%s3501_s5 + $0xe0] sm:$0xff] }
  0x29   :  { %v2325_v11 = vld [vmem:[%s3501_s5 + $0xd8] sm:$0xff]  ;;  %v2328_v12 = vld [vmem:[%s3501_s5 + $0xf0] sm:$0xff]  ;;  %v2327_v13 = vld [vmem:[%s3501_s5 + $0xe8] sm:$0xff] }
  0x2a   :  { %594 = vperm.xlu1 %2839, %v2197_v30   ;;  %v2339_v14 = vld [vmem:[%s3503_s7 + $0xc] sm:$0xf]  ;;  %v2329_v15 = vld [vmem:[%s3501_s5 + $0xf8] sm:$0xff] }
  0x2b   :  { %589 = vperm.xlu0 %2838, %v2196_v31   ;;  %v253_v3 = vld [vmem:[%s3500_s4 + $0x38] sm:$0xff] }
  0x2e   :  { %604 = vperm.xlu1 %2839, %v2199_v32  }
  0x2f   :  { %599 = vperm.xlu0 %2838, %v2198_v33  }
  0x32   :  { %788 = vperm.xlu1 %2839, %v2218_v34  }
  0x33   :  { %609 = vperm.xlu0 %2838, %v2200_v35  }
  0x36   :  { %798 = vperm.xlu1 %2839, %v2220_v36  }
  0x37   :  { %793 = vperm.xlu0 %2838, %v2219_v37  }
  0x3a   :  { %808 = vperm.xlu1 %2839, %v2222_v38  }
  0x3b   :  { %803 = vperm.xlu0 %2838, %v2221_v39  }
  0x3e   :  { %818 = vperm.xlu1 %2839, %v2224_v40  }
  0x3f   :  { %813 = vperm.xlu0 %2838, %v2223_v41  }
  0x42   :  { %985 = vperm.xlu1 %2839, %v2235_v42  }
  0x43   :  { %823 = vperm.xlu0 %2838, %v2225_v43  }
  0x46   :  { %1103 = vperm.xlu1 %2839, %v2246_v44  }
  0x47   :  { %1098 = vperm.xlu0 %2838, %v2245_v45  }
  0x4a   :  { %1113 = vperm.xlu1 %2839, %v2248_v46  }
  0x4b   :  { %1108 = vperm.xlu0 %2838, %v2247_v47  }
  0x4e   :  { %1123 = vperm.xlu1 %2839, %v2250_v48  }
  0x4f   :  { %1118 = vperm.xlu0 %2838, %v2249_v49  }
  0x52   :  { %1133 = vperm.xlu1 %2839, %v2252_v50  }
  0x53   :  { %1128 = vperm.xlu0 %2838, %v2251_v51  }
  0x56   :  { %1317 = vperm.xlu1 %2839, %v2271_v52  }
  0x57   :  { %1312 = vperm.xlu0 %2838, %v2270_v53  }
  0x5a   :  { %1327 = vperm.xlu1 %2839, %v2273_v54  }
  0x5b   :  { %1322 = vperm.xlu0 %2838, %v2272_v55  }
  0x5e   :  { %1337 = vperm.xlu1 %2839, %v2275_v56  }
  0x5f   :  { %1332 = vperm.xlu0 %2838, %v2274_v57  }
  0x62   :  { %1347 = vperm.xlu1 %2839, %v2277_v58  }
  0x63   :  { %1342 = vperm.xlu0 %2838, %v2276_v59  }
  0x66   :  { %1622 = vperm.xlu1 %2839, %v2297_v60   ;;  %v247_v60 = vld [vmem:[%s3500_s4 + $0x8] sm:$0xff] }
  0x67   :  { %1509 = vperm.xlu0 %2838, %v2287_v61   ;;  %v248_v61 = vld [vmem:[%s3500_s4 + $0x10] sm:$0xff] }
  0x6a   :  { %1632 = vperm.xlu1 %2839, %v2299_v62   ;;  %v249_v62 = vld [vmem:[%s3500_s4 + $0x18] sm:$0xff] }
  0x6b   :  { %1627 = vperm.xlu0 %2838, %v2298_v63   ;;  %v250_v63 = vld [vmem:[%s3500_s4 + $0x20] sm:$0xff] }
  0x6e   :  { %1642 = vperm.xlu1 %2839, %v2301_v1   ;;  %v251_v1 = vld [vmem:[%s3500_s4 + $0x28] sm:$0xff] }
  0x6f   :  { %1637 = vperm.xlu0 %2838, %v2300_v2   ;;  %v252_v2 = vld [vmem:[%s3500_s4 + $0x30] sm:$0xff] }
  0x72   :  { %1652 = vperm.xlu1 %2839, %v2303_v4   ;;  %v2881_v4 = vmov 0.0|0.0  }
  0x73   :  { %1647 = vperm.xlu0 %2838, %v2302_v5   ;;  %2737 = vmatprep.subr.bf16.mxu0 %v2881_v4  ;;  %v2883_v5 = vmov 0.0  }
  0x74   :  { %2535 = vmatprep.mubr.msk.f32.mxu0 %vm2882_vm11, %v2883_v5 }
  0x76   :  { %1836 = vperm.xlu1 %2839, %v2322_v6  }
  0x77   :  { %1657 = vperm.xlu0 %2838, %v2304_v7  }
  0x7a   :  { %1846 = vperm.xlu1 %2839, %v2324_v8  }
  0x7b   :  { %1841 = vperm.xlu0 %2838, %v2323_v9  }
  0x7e   :  { %1856 = vperm.xlu1 %2839, %v2326_v10  }
  0x7f   :  { %1851 = vperm.xlu0 %2838, %v2325_v11  }
  0x81   :  { %v61_v16 = vpop.permute.xlu1 %60 }
  0x82   :  { %1866 = vperm.xlu1 %2839, %v2328_v12   ;;  %v51_v17 = vpop.permute.xlu0 %50 }
  0x83   :  { %1861 = vperm.xlu0 %2838, %v2327_v13  }
  0x85   :  { %v66_v18 = vpop.permute.xlu1 %65 }
  0x86   :  { %2033 = vperm.xlu1 %2839, %v2339_v14   ;;  %v56_v19 = vpop.permute.xlu0 %55 }
  0x87   :  { %1871 = vperm.xlu0 %2838, %v2329_v15  }
  0x89   :  { %v76_v30 = vpop.permute.xlu1 %75 }
  0x8a   :  { %v71_v33 = vpop.permute.xlu0 %70 }
  0x8d   :  { %v86_v45 = vpop.permute.xlu1 %85 }
  0x8e   :  { %v81_v48 = vpop.permute.xlu0 %80 }
  0x91   :  { %v270_v6 = vpop.permute.xlu1 %269 }
  0x92   :  { %v265_v7 = vpop.permute.xlu0 %264 }
  0x95   :  { %v280_v8 = vpop.permute.xlu1 %279 }
  0x96   :  { %v275_v10 = vpop.permute.xlu0 %274 }
  0xd8   :  { %v2481_v20 = vpop.f32.mrb[0].mxu0 }
  0xd9   :  { %v189_v21 = vadd.f32 %v2481_v20, %v56_v19  ;;  %v183_v22 = vpop.f32.mrb[1].mxu0  ;;  %v290_v20 = vpop.permute.xlu1 %289 }
  0xda   :  { %v184_v23 = vadd.f32 %v183_v22, %v51_v17 }
  0xdb   :  { %v231_v24 = vmul.f32 0.01, %v189_v21  ;;  %vm223_vm3 = vcmp.gt.f32.partialorder %v189_v21, 0.0 }
  0xdc   :  { %v230_v25 = vmul.f32 0.01, %v184_v23  ;;  %v2484_v26 = vpop.f32.mrb[2].mxu0  ;;  %vm222_vm4 = vcmp.gt.f32.partialorder %v184_v23, 0.0 }
  0xdd   :  { %v199_v27 = vadd.f32 %v2484_v26, %v66_v18  ;;  %v193_v28 = vpop.f32.mrb[3].mxu0  ;;  %v239_v29 = vsel %vm223_vm3, %v189_v21, %v231_v24 }
  0xde   :  { %v194_v31 = vadd.f32 %v193_v28, %v61_v16  ;;  %v238_v32 = vsel %vm222_vm4, %v184_v23, %v230_v25  ;;  %v285_v23 = vpop.permute.xlu0 %284 }
  0xdf   :  { %vm225_vm5 = vcmp.gt.f32.partialorder %v199_v27, 0.0  ;;  %v233_v34 = vmul.f32 0.01, %v199_v27  ;;  %v2721_v35 = vpack.c.bf16 %v239_v29, %v238_v32 }
  0xe0   :  { %vm224_vm6 = vcmp.gt.f32.partialorder %v194_v31, 0.0  ;;  %v232_v36 = vmul.f32 0.01, %v194_v31  ;;  %v2487_v37 = vpop.f32.mrb[4].mxu0 }
  0xe1   :  { %v209_v38 = vadd.f32 %v2487_v37, %v76_v30  ;;  %v203_v39 = vpop.f32.mrb[5].mxu0  ;;  %2722 = vmatprep.subr.bf16.mxu1 %v2721_v35  ;;  %v241_v40 = vsel %vm225_vm5, %v199_v27, %v233_v34 }
  0xe2   :  { %v204_v41 = vadd.f32 %v203_v39, %v71_v33  ;;  %2724 = vmatpush3.bf16.msra.mxu1 %v2721_v35  ;;  %v240_v42 = vsel %vm224_vm6, %v194_v31, %v232_v36  ;;  %v300_v35 = vpop.permute.xlu1 %299 }
  0xe3   :  { %vm227_vm7 = vcmp.gt.f32.partialorder %v209_v38, 0.0  ;;  %v235_v43 = vmul.f32 0.01, %v209_v38  ;;  %v2725_v44 = vpack.c.bf16 %v241_v40, %v240_v42 }
  0xe4   :  { %vm226_vm8 = vcmp.gt.f32.partialorder %v204_v41, 0.0  ;;  %v234_v46 = vmul.f32 0.01, %v204_v41  ;;  %v2490_v47 = vpop.f32.mrb[6].mxu0 }
  0xe5   :  { %v219_v49 = vadd.f32 %v2490_v47, %v86_v45  ;;  %v213_v50 = vpop.f32.mrb[7].mxu0  ;;  %2726 = vmatprep.subr.bf16.mxu1 %v2725_v44  ;;  %v243_v51 = vsel %vm227_vm7, %v209_v38, %v235_v43  ;;  %v295_v38 = vpop.permute.xlu0 %294 }
  0xe6   :  { %v214_v52 = vadd.f32 %v213_v50, %v81_v48  ;;  %2728 = vmatpush3.bf16.msra.mxu1 %v2725_v44  ;;  %v242_v53 = vsel %vm226_vm8, %v204_v41, %v234_v46  ;;  %v456_v50 = vld [vmem:[%s3502_s6] sm:$0xf] }
  0xe7   :  { %vm229_vm9 = vcmp.gt.f32.partialorder %v219_v49, 0.0  ;;  %v237_v54 = vmul.f32 0.01, %v219_v49  ;;  %v2729_v55 = vpack.c.bf16 %v243_v51, %v242_v53  ;;  %v2185_v51 = vld [vmem:[%s3498_s2 + $0x40] sm:$0xff] }
  0xe8   :  { %vm228_vm10 = vcmp.gt.f32.partialorder %v214_v52, 0.0  ;;  %v236_v56 = vmul.f32 0.01, %v214_v52 }
  0xe9   :  { %2730 = vmatprep.subr.bf16.mxu1 %v2729_v55  ;;  %v245_v57 = vsel %vm229_vm9, %v219_v49, %v237_v54 }
  0xea   :  { %2732 = vmatpush3.bf16.msra.mxu1 %v2729_v55  ;;  %v244_v58 = vsel %vm228_vm10, %v214_v52, %v236_v56  ;;  %v461_v52 = vpop.permute.xlu0 %460 }
  0xeb   :  { %v2733_v59 = vpack.c.bf16 %v245_v57, %v244_v58 }
  0xed   :  { %2734 = vmatprep.subr.bf16.mxu1 %v2733_v59 }
  0xee   :  { %2736 = vmatpush3.bf16.msra.mxu1 %v2733_v59 }
  0xf1   :  { %2508 = vmatmul.mubr.msk.f32.vlgmr.msra.gmra.mrb[0].mxu1 %vm302_vm2, %v247_v60  ;;  %v31_v60 = vld [vmem:[%s3497_s1] sm:$0x3] }
  0xf2   :  { %2510 = vmatprep.mubr.msk.f32.mxu1 %vm302_vm2, %v248_v61 }
  0xf5   :  { %2511 = vmatmul.mubr.msk.f32.gmra.mrb[2].mxu1 %vm302_vm2, %v249_v62 }
  0xf6   :  { %2513 = vmatprep.mubr.msk.f32.mxu1 %vm302_vm2, %v250_v63 }
  0xf9   :  { %2514 = vmatmul.mubr.msk.f32.gmra.mrb[4].mxu1 %vm302_vm2, %v251_v1  ;;  %v2186_v1 = vld [vmem:[%s3498_s2 + $0x48] sm:$0xff] }
  0xfa   :  { %2516 = vmatprep.mubr.msk.f32.mxu1 %vm302_vm2, %v252_v2  ;;  %v2187_v2 = vld [vmem:[%s3498_s2 + $0x50] sm:$0xff] }
  0xfd   :  { %2517 = vmatmul.mubr.msk.f32.gmra.mrb[6].mxu1 %vm302_vm2, %v253_v3  ;;  %v2188_v3 = vld [vmem:[%s3498_s2 + $0x58] sm:$0xff] }
 0x1c4   :  { %v2509_v9 = vpop.f32.mrb[0].mxu1 }
 0x1c5   :  { %v399_v11 = vadd.f32 %v2509_v9, %v270_v6  ;;  %v393_v12 = vpop.f32.mrb[1].mxu1  ;;  %v2189_v6 = vld [vmem:[%s3498_s2 + $0x60] sm:$0xff]  ;;  %v2192_v9 = vld [vmem:[%s3498_s2 + $0x78] sm:$0xff] }
 0x1c6   :  { %v394_v13 = vadd.f32 %v393_v12, %v265_v7  ;;  %v2190_v7 = vld [vmem:[%s3498_s2 + $0x68] sm:$0xff]  ;;  %v575_v12 = vpop.permute.xlu1 %574 }
 0x1c7   :  { %vm433_vm12 = vcmp.gt.f32.partialorder %v399_v11, 0.0  ;;  %v441_v14 = vmul.f32 0.01, %v399_v11 }
 0x1c8   :  { %vm432_vm13 = vcmp.gt.f32.partialorder %v394_v13, 0.0  ;;  %v440_v15 = vmul.f32 0.01, %v394_v13  ;;  %v2512_v16 = vpop.f32.mrb[2].mxu1 }
 0x1c9   :  { %v449_v17 = vsel %vm433_vm12, %v399_v11, %v441_v14  ;;  %v409_v18 = vadd.f32 %v2512_v16, %v280_v8  ;;  %v403_v19 = vpop.f32.mrb[3].mxu1  ;;  %v2191_v8 = vld [vmem:[%s3498_s2 + $0x70] sm:$0xff]  ;;  %v580_v11 = vpop.permute.xlu0 %579 }
 0x1ca   :  { %v448_v21 = vsel %vm432_vm13, %v394_v13, %v440_v15  ;;  %v404_v22 = vadd.f32 %v403_v19, %v275_v10  ;;  %v2210_v10 = vld [vmem:[%s3500_s4 + $0x40] sm:$0xff]  ;;  %v585_v15 = vpop.permute.xlu1 %584 }
 0x1cb   :  { %v2738_v24 = vpack.c.bf16 %v449_v17, %v448_v21  ;;  %vm435_vm14 = vcmp.gt.f32.partialorder %v409_v18, 0.0  ;;  %v443_v25 = vmul.f32 0.01, %v409_v18  ;;  %2568 = vmatprep.mubr.msk.f32.mxu1 %vm302_vm2, %v2210_v10 }
 0x1cc   :  { %vm434_vm15 = vcmp.gt.f32.partialorder %v404_v22, 0.0  ;;  %v442_v26 = vmul.f32 0.01, %v404_v22  ;;  %v2515_v27 = vpop.f32.mrb[4].mxu1 }
 0x1cd   :  { %v451_v28 = vsel %vm435_vm14, %v409_v18, %v443_v25  ;;  %v419_v29 = vadd.f32 %v2515_v27, %v290_v20  ;;  %v413_v30 = vpop.f32.mrb[5].mxu1  ;;  %2739 = vmatpush3.bf16.msra.mxu0 %v2738_v24  ;;  %v590_v13 = vpop.permute.xlu0 %589 }
 0x1ce   :  { %v450_v31 = vsel %vm434_vm15, %v404_v22, %v442_v26  ;;  %v414_v32 = vadd.f32 %v413_v30, %v285_v23  ;;  %2740 = vmatprep.subr.bf16.mxu0 %v2881_v4 }
 0x1cf   :  { %v2741_v33 = vpack.c.bf16 %v451_v28, %v450_v31  ;;  %vm437_vm3 = vcmp.gt.f32.partialorder %v419_v29, 0.0  ;;  %v445_v34 = vmul.f32 0.01, %v419_v29  ;;  %v595_v28 = vpop.permute.xlu1 %594 }
 0x1d0   :  { %vm436_vm4 = vcmp.gt.f32.partialorder %v414_v32, 0.0  ;;  %v444_v36 = vmul.f32 0.01, %v414_v32  ;;  %v2518_v37 = vpop.f32.mrb[6].mxu1 }
 0x1d1   :  { %v453_v39 = vsel %vm437_vm3, %v419_v29, %v445_v34  ;;  %v429_v40 = vadd.f32 %v2518_v37, %v300_v35  ;;  %v423_v41 = vpop.f32.mrb[7].mxu1  ;;  %2742 = vmatpush3.bf16.msra.mxu0 %v2741_v33  ;;  %v600_v25 = vpop.permute.xlu0 %599 }
 0x1d2   :  { %v452_v42 = vsel %vm436_vm4, %v414_v32, %v444_v36  ;;  %v424_v43 = vadd.f32 %v423_v41, %v295_v38  ;;  %2743 = vmatprep.subr.bf16.mxu0 %v2881_v4 }
 0x1d3   :  { %v2744_v44 = vpack.c.bf16 %v453_v39, %v452_v42  ;;  %vm439_vm5 = vcmp.gt.f32.partialorder %v429_v40, 0.0  ;;  %v447_v45 = vmul.f32 0.01, %v429_v40 }
 0x1d4   :  { %vm438_vm6 = vcmp.gt.f32.partialorder %v424_v43, 0.0  ;;  %v446_v46 = vmul.f32 0.01, %v424_v43 }
 0x1d5   :  { %v455_v47 = vsel %vm439_vm5, %v429_v40, %v447_v45  ;;  %2745 = vmatpush3.bf16.msra.mxu0 %v2744_v44  ;;  %v610_v40 = vpop.permute.xlu0 %609 }
 0x1d6   :  { %v454_v48 = vsel %vm438_vm6, %v424_v43, %v446_v46  ;;  %2746 = vmatprep.subr.bf16.mxu0 %v2881_v4  ;;  %v605_v43 = vpop.permute.xlu1 %604 }
 0x1d7   :  { %v2747_v49 = vpack.c.bf16 %v455_v47, %v454_v48 }
 0x1d9   :  { %2748 = vmatpush3.bf16.msra.mxu0 %v2747_v49 }
 0x1dc   :  { %2536 = vmatmul.mubr.msk.f32.vlgmr.msra.gmra.mrb[8].mxu0 %vm302_vm2, %v456_v50 }
 0x1dd   :  { %2540 = vmatprep.mubr.msk.f32.mxu0 %vm88_vm1, %v2185_v51 }
 0x2af   :  { %v532_v53 = vpop.f32.mrb[8].mxu0 }
 0x2b0   :  { %v533_v54 = vadd.f32 %v532_v53, %v461_v52  ;;  %v2537_v55 = vpop.f32.mrb[9].mxu0 }
 0x2b1   :  { %v2211_v55 = vld [vmem:[%s3500_s4 + $0x48] sm:$0xff] }
 0x2b2   :  { %2840 = vtanh.f32 %v533_v54  ;;  %v538_v59 = vrot.slane %v533_v54, 2 }
 0x2b4   :  { %v540_v61 = vsub.f32 %v31_v60, %v538_v59  ;;  %v2214_v59 = vld [vmem:[%s3500_s4 + $0x60] sm:$0xff]  ;;  %v2215_v60 = vld [vmem:[%s3500_s4 + $0x68] sm:$0xff] }
 0x2bc   :  { %v3221_v56 = vpop.eup %2840 }
 0x2bd   :  { %v541_v57 = vsub.f32 0.0, %v3221_v56 }
 0x2bf   :  { %v542_v58 = vmul.f32 1.442695, %v541_v57  ;;  %v2212_v57 = vld [vmem:[%s3500_s4 + $0x50] sm:$0xff] }
 0x2c1   :  { %2842 = vpow2.f32 %v542_v58  ;;  %v2213_v58 = vld [vmem:[%s3500_s4 + $0x58] sm:$0xff] }
 0x2cb   :  { %v2843_v62 = vpop.eup %2842 }
 0x2cc   :  { %v3227_v63 = vmul.f32 %v2843_v62, %v540_v61  ;;  %v2216_v61 = vld [vmem:[%s3500_s4 + $0x70] sm:$0xff]  ;;  %v2217_v62 = vld [vmem:[%s3500_s4 + $0x78] sm:$0xff] }
 0x2ce   :  { %2538 = vmatprep.subr.msk.mxu0 %vm113_vm0, %v3227_v63 }
 0x2cf   :  { %2539 = vmatpush3.msk.msra.mxu0 %vm113_vm0, %v3227_v63 }
 0x2d0   :  { %2541 = vmatmul.mubr.msk.f32.vlgmr.msra.gmra.mrb[10].mxu0 %vm88_vm1, %v2186_v1  ;;  %2765 = vmatprep.subr.bf16.mxu0 %v2881_v4  ;;  %v794_v1 = vpop.permute.xlu0 %793 }
 0x2d1   :  { %2543 = vmatprep.mubr.msk.f32.mxu0 %vm88_vm1, %v2187_v2  ;;  %v789_v2 = vpop.permute.xlu1 %788 }
 0x2d4   :  { %2544 = vmatmul.mubr.msk.f32.gmra.mrb[12].mxu0 %vm88_vm1, %v2188_v3  ;;  %v804_v3 = vpop.permute.xlu0 %803 }
 0x2d5   :  { %2546 = vmatprep.mubr.msk.f32.mxu0 %vm88_vm1, %v2189_v6 }
 0x2d8   :  { %2547 = vmatmul.mubr.msk.f32.gmra.mrb[14].mxu0 %vm88_vm1, %v2190_v7  ;;  %v799_v7 = vpop.permute.xlu1 %798 }
 0x2d9   :  { %2549 = vmatprep.mubr.msk.f32.mxu0 %vm88_vm1, %v2191_v8 }
 0x2dc   :  { %2550 = vmatmul.mubr.msk.f32.gmra.mrb[16].mxu0 %vm88_vm1, %v2192_v9 }
 0x2dd   :  { %2596 = vmatprep.mubr.msk.f32.mxu0 %vm2882_vm11, %v2883_v5 }
 0x3a3   :  { %v2542_v14 = vpop.f32.mrb[10].mxu0 }
 0x3a4   :  { %v711_v16 = vadd.f32 %v2542_v14, %v580_v11  ;;  %v705_v17 = vpop.f32.mrb[11].mxu0 }
 0x3a5   :  { %v706_v18 = vadd.f32 %v705_v17, %v575_v12  ;;  %v814_v17 = vpop.permute.xlu0 %813 }
 0x3a6   :  { %vm745_vm7 = vcmp.gt.f32.partialorder %v711_v16, 0.0  ;;  %v753_v19 = vmul.f32 0.01, %v711_v16 }
 0x3a7   :  { %vm744_vm8 = vcmp.gt.f32.partialorder %v706_v18, 0.0  ;;  %v752_v20 = vmul.f32 0.01, %v706_v18  ;;  %v2545_v21 = vpop.f32.mrb[12].mxu0 }
 0x3a8   :  { %v721_v22 = vadd.f32 %v2545_v21, %v590_v13  ;;  %v715_v23 = vpop.f32.mrb[13].mxu0  ;;  %v761_v24 = vsel %vm745_vm7, %v711_v16, %v753_v19 }
 0x3a9   :  { %v716_v26 = vadd.f32 %v715_v23, %v585_v15  ;;  %v760_v27 = vsel %vm744_vm8, %v706_v18, %v752_v20  ;;  %v809_v20 = vpop.permute.xlu1 %808 }
 0x3aa   :  { %vm747_vm9 = vcmp.gt.f32.partialorder %v721_v22, 0.0  ;;  %v755_v29 = vmul.f32 0.01, %v721_v22  ;;  %v2749_v30 = vpack.c.bf16 %v761_v24, %v760_v27 }
 0x3ab   :  { %vm746_vm10 = vcmp.gt.f32.partialorder %v716_v26, 0.0  ;;  %v754_v31 = vmul.f32 0.01, %v716_v26  ;;  %v2548_v32 = vpop.f32.mrb[14].mxu0 }
 0x3ac   :  { %v731_v33 = vadd.f32 %v2548_v32, %v600_v25  ;;  %v725_v34 = vpop.f32.mrb[15].mxu0  ;;  %2750 = vmatprep.subr.bf16.mxu1 %v2749_v30  ;;  %v763_v35 = vsel %vm747_vm9, %v721_v22, %v755_v29  ;;  %v824_v32 = vpop.permute.xlu0 %823 }
 0x3ad   :  { %v726_v36 = vadd.f32 %v725_v34, %v595_v28  ;;  %2752 = vmatpush3.bf16.msra.mxu1 %v2749_v30  ;;  %v762_v37 = vsel %vm746_vm10, %v716_v26, %v754_v31 }
 0x3ae   :  { %vm749_vm12 = vcmp.gt.f32.partialorder %v731_v33, 0.0  ;;  %v757_v38 = vmul.f32 0.01, %v731_v33  ;;  %v2753_v39 = vpack.c.bf16 %v763_v35, %v762_v37  ;;  %v819_v35 = vpop.permute.xlu1 %818 }
 0x3af   :  { %vm748_vm13 = vcmp.gt.f32.partialorder %v726_v36, 0.0  ;;  %v756_v41 = vmul.f32 0.01, %v726_v36  ;;  %v2551_v42 = vpop.f32.mrb[16].mxu0 }
 0x3b0   :  { %v741_v44 = vadd.f32 %v2551_v42, %v610_v40  ;;  %v735_v45 = vpop.f32.mrb[17].mxu0  ;;  %2754 = vmatprep.subr.bf16.mxu1 %v2753_v39  ;;  %v765_v46 = vsel %vm749_vm12, %v731_v33, %v757_v38  ;;  %vm545_vm12 = vcmask 123904  }
 0x3b1   :  { %v736_v47 = vadd.f32 %v735_v45, %v605_v43  ;;  %2756 = vmatpush3.bf16.msra.mxu1 %v2753_v39  ;;  %v764_v48 = vsel %vm748_vm13, %v726_v36, %v756_v41 }
 0x3b2   :  { %vm751_vm14 = vcmp.gt.f32.partialorder %v741_v44, 0.0  ;;  %v759_v49 = vmul.f32 0.01, %v741_v44  ;;  %v2757_v50 = vpack.c.bf16 %v765_v46, %v764_v48  ;;  %v2237_v48 = vld [vmem:[%s3498_s2 + $0x80] sm:$0xff] }
 0x3b3   :  { %vm750_vm15 = vcmp.gt.f32.partialorder %v736_v47, 0.0  ;;  %v758_v51 = vmul.f32 0.01, %v736_v47 }
 0x3b4   :  { %2758 = vmatprep.subr.bf16.mxu1 %v2757_v50  ;;  %v767_v52 = vsel %vm751_vm14, %v741_v44, %v759_v49  ;;  %v546_v49 = vsel %vm545_vm12, %v3221_v56, 0.0 }
 0x3b5   :  { %2760 = vmatpush3.bf16.msra.mxu1 %v2757_v50  ;;  %v766_v53 = vsel %vm750_vm15, %v736_v47, %v758_v51  ;;  %v2234_v47 = vld [vmem:[%s3502_s6 + $0x4] sm:$0xf]  ;;  %v986_v50 = vpop.permute.xlu1 %985 }
 0x3b6   :  { %v2761_v54 = vpack.c.bf16 %v767_v52, %v766_v53  ;;  %v547_v52 = vrot.slane %v546_v49, 4 }
 0x3b8   :  { %2762 = vmatprep.subr.bf16.mxu1 %v2761_v54 }
 0x3b9   :  { %2764 = vmatpush3.bf16.msra.mxu1 %v2761_v54 }
 0x3bc   :  { %2569 = vmatmul.mubr.msk.f32.vlgmr.msra.gmra.mrb[8].mxu1 %vm302_vm2, %v2211_v55  ;;  %v548_v55 = vadd.f32 %v547_v52, %v546_v49 }
 0x3bd   :  { %2571 = vmatprep.mubr.msk.f32.mxu1 %vm302_vm2, %v2212_v57 }
 0x3be   :  { %v549_v57 = vrot.slane %v548_v55, 2 }
 0x3c0   :  { %2572 = vmatmul.mubr.msk.f32.gmra.mrb[10].mxu1 %vm302_vm2, %v2213_v58 }
 0x3c1   :  { %2574 = vmatprep.mubr.msk.f32.mxu1 %vm302_vm2, %v2214_v59  ;;  %v550_v59 = vadd.f32 %v549_v57, %v548_v55 }
 0x3c4   :  { %2575 = vmatmul.mubr.msk.f32.gmra.mrb[12].mxu1 %vm302_vm2, %v2215_v60 }
 0x3c5   :  { %2577 = vmatprep.mubr.msk.f32.mxu1 %vm302_vm2, %v2216_v61 }
 0x3c8   :  { %2578 = vmatmul.mubr.msk.f32.gmra.mrb[14].mxu1 %vm302_vm2, %v2217_v62 }
 0x48f   :  { %v2570_v6 = vpop.f32.mrb[8].mxu1 }
 0x490   :  { %v922_v8 = vadd.f32 %v2570_v6, %v794_v1  ;;  %v916_v9 = vpop.f32.mrb[9].mxu1 }
 0x491   :  { %v917_v10 = vadd.f32 %v916_v9, %v789_v2  ;;  %v551_v2 = vrot.slane %v550_v59, 1 }
 0x492   :  { %vm956_vm3 = vcmp.gt.f32.partialorder %v922_v8, 0.0  ;;  %v964_v11 = vmul.f32 0.01, %v922_v8 }
 0x493   :  { %vm955_vm4 = vcmp.gt.f32.partialorder %v917_v10, 0.0  ;;  %v963_v12 = vmul.f32 0.01, %v917_v10  ;;  %v2573_v13 = vpop.f32.mrb[10].mxu1  ;;  %v552_v56 = vadd.f32 %v551_v2, %v550_v59 }
 0x494   :  { %v972_v14 = vsel %vm956_vm3, %v922_v8, %v964_v11  ;;  %v932_v15 = vadd.f32 %v2573_v13, %v804_v3  ;;  %v926_v16 = vpop.f32.mrb[11].mxu1 }
 0x495   :  { %v971_v18 = vsel %vm955_vm4, %v917_v10, %v963_v12  ;;  %v927_v19 = vadd.f32 %v926_v16, %v799_v7  ;;  %v553_v10 = vsub.f32 0.0, %v552_v56  ;;  %v2238_v16 = vld [vmem:[%s3498_s2 + $0x88] sm:$0xff] }
 0x496   :  { %v2766_v21 = vpack.c.bf16 %v972_v14, %v971_v18  ;;  %vm958_vm5 = vcmp.gt.f32.partialorder %v932_v15, 0.0  ;;  %v966_v22 = vmul.f32 0.01, %v932_v15  ;;  %v2241_v18 = vld [vmem:[%s3498_s2 + $0xa0] sm:$0xff] }
 0x497   :  { %vm957_vm6 = vcmp.gt.f32.partialorder %v927_v19, 0.0  ;;  %v965_v23 = vmul.f32 0.01, %v927_v19  ;;  %v2576_v24 = vpop.f32.mrb[12].mxu1 }
 0x498   :  { %v974_v25 = vsel %vm958_vm5, %v932_v15, %v966_v22  ;;  %v942_v26 = vadd.f32 %v2576_v24, %v814_v17  ;;  %v936_v27 = vpop.f32.mrb[13].mxu1  ;;  %2767 = vmatpush3.bf16.msra.mxu0 %v2766_v21  ;;  %v2239_v17 = vld [vmem:[%s3498_s2 + $0x90] sm:$0xff]  ;;  %v2244_v21 = vld [vmem:[%s3498_s2 + $0xb8] sm:$0xff]  ;;  %v2262_v22 = vld [vmem:[%s3500_s4 + $0x80] sm:$0xff]  ;;  %v1099_v24 = vpop.permute.xlu0 %1098 }
 0x499   :  { %v973_v28 = vsel %vm957_vm6, %v927_v19, %v965_v23  ;;  %v937_v29 = vadd.f32 %v936_v27, %v809_v20  ;;  %2768 = vmatprep.subr.bf16.mxu0 %v2881_v4  ;;  %v2242_v19 = vld [vmem:[%s3498_s2 + $0xa8] sm:$0xff]  ;;  %v2243_v20 = vld [vmem:[%s3498_s2 + $0xb0] sm:$0xff]  ;;  %2629 = vmatprep.mubr.msk.f32.mxu1 %vm302_vm2, %v2262_v22  ;;  %v1104_v23 = vpop.permute.xlu1 %1103 }
 0x49a   :  { %v2769_v30 = vpack.c.bf16 %v974_v25, %v973_v28  ;;  %vm960_vm7 = vcmp.gt.f32.partialorder %v942_v26, 0.0  ;;  %v968_v31 = vmul.f32 0.01, %v942_v26 }
 0x49b   :  { %vm959_vm8 = vcmp.gt.f32.partialorder %v937_v29, 0.0  ;;  %v967_v33 = vmul.f32 0.01, %v937_v29  ;;  %v2579_v34 = vpop.f32.mrb[14].mxu1 }
 0x49c   :  { %v976_v36 = vsel %vm960_vm7, %v942_v26, %v968_v31  ;;  %v952_v37 = vadd.f32 %v2579_v34, %v824_v32  ;;  %v946_v38 = vpop.f32.mrb[15].mxu1  ;;  %2770 = vmatpush3.bf16.msra.mxu0 %v2769_v30  ;;  %v1109_v27 = vpop.permute.xlu0 %1108 }
 0x49d   :  { %v975_v39 = vsel %vm959_vm8, %v937_v29, %v967_v33  ;;  %v947_v40 = vadd.f32 %v946_v38, %v819_v35  ;;  %2771 = vmatprep.subr.bf16.mxu0 %v2881_v4  ;;  %v1114_v25 = vpop.permute.xlu1 %1113 }
 0x49e   :  { %v2772_v41 = vpack.c.bf16 %v976_v36, %v975_v39  ;;  %vm962_vm9 = vcmp.gt.f32.partialorder %v952_v37, 0.0  ;;  %v970_v42 = vmul.f32 0.01, %v952_v37 }
 0x49f   :  { %vm961_vm10 = vcmp.gt.f32.partialorder %v947_v40, 0.0  ;;  %v969_v43 = vmul.f32 0.01, %v947_v40 }
 0x4a0   :  { %v978_v44 = vsel %vm962_vm9, %v952_v37, %v970_v42  ;;  %2773 = vmatpush3.bf16.msra.mxu0 %v2772_v41 }
 0x4a1   :  { %v977_v45 = vsel %vm961_vm10, %v947_v40, %v969_v43  ;;  %2774 = vmatprep.subr.bf16.mxu0 %v2881_v4  ;;  %v1124_v37 = vpop.permute.xlu1 %1123  ;;  %v1119_v40 = vpop.permute.xlu0 %1118 }
 0x4a2   :  { %v2775_v46 = vpack.c.bf16 %v978_v44, %v977_v45 }
 0x4a4   :  { %2776 = vmatpush3.bf16.msra.mxu0 %v2775_v46 }
 0x4a5   :  { %v1134_v52 = vpop.permute.xlu1 %1133  ;;  %v1129_v55 = vpop.permute.xlu0 %1128 }
 0x4a7   :  { %2597 = vmatmul.mubr.msk.f32.vlgmr.msra.gmra.mrb[18].mxu0 %vm302_vm2, %v2234_v47 }
 0x4a8   :  { %2601 = vmatprep.mubr.msk.f32.mxu0 %vm88_vm1, %v2237_v48 }
 0x57a   :  { %v1057_v51 = vpop.f32.mrb[18].mxu0 }
 0x57b   :  { %v1058_v53 = vadd.f32 %v1057_v51, %v986_v50  ;;  %v2598_v54 = vpop.f32.mrb[19].mxu0 }
 0x57d   :  { %2844 = vtanh.f32 %v1058_v53  ;;  %v1063_v8 = vrot.slane %v1058_v53, 2 }
 0x57f   :  { %v1065_v12 = vsub.f32 %v2933_v0, %v1063_v8  ;;  %v2240_v0 = vld [vmem:[%s3498_s2 + $0x98] sm:$0xff]  ;;  %v2264_v8 = vld [vmem:[%s3500_s4 + $0x90] sm:$0xff] }
 0x587   :  { %v2845_v58 = vpop.eup %2844 }
 0x588   :  { %v1066_v60 = vsub.f32 0.0, %v2845_v58  ;;  %v1070_v61 = vsel %vm545_vm12, %v2845_v58, 0.0 }
 0x589   :  { %v1071_v62 = vrot.slane %v1070_v61, 4 }
 0x58a   :  { %v1067_v1 = vmul.f32 1.442695, %v1066_v60 }
 0x58b   :  { %v1072_v3 = vadd.f32 %v1071_v62, %v1070_v61 }
 0x58c   :  { %2846 = vpow2.f32 %v1067_v1 }
 0x58d   :  { %v1073_v6 = vrot.slane %v1072_v3, 2 }
 0x58f   :  { %v1074_v7 = vadd.f32 %v1073_v6, %v1072_v3 }
 0x591   :  { %v1075_v9 = vrot.slane %v1074_v7, 1 }
 0x593   :  { %v1076_v11 = vadd.f32 %v1075_v9, %v1074_v7  ;;  %v2263_v7 = vld [vmem:[%s3500_s4 + $0x88] sm:$0xff]  ;;  %v2265_v9 = vld [vmem:[%s3500_s4 + $0x98] sm:$0xff] }
 0x595   :  { %v3311_v13 = vsub.f32 %v553_v10, %v1076_v11  ;;  %v2266_v10 = vld [vmem:[%s3500_s4 + $0xa0] sm:$0xff]  ;;  %v2267_v11 = vld [vmem:[%s3500_s4 + $0xa8] sm:$0xff] }
 0x596   :  { %v2847_v14 = vpop.eup %2846 }
 0x597   :  { %v3313_v15 = vmul.f32 %v2847_v14, %v1065_v12  ;;  %v2268_v12 = vld [vmem:[%s3500_s4 + $0xb0] sm:$0xff]  ;;  %v2269_v14 = vld [vmem:[%s3500_s4 + $0xb8] sm:$0xff] }
 0x599   :  { %2599 = vmatprep.subr.msk.mxu0 %vm113_vm0, %v3313_v15 }
 0x59a   :  { %2600 = vmatpush3.msk.msra.mxu0 %vm113_vm0, %v3313_v15 }
 0x59b   :  { %2602 = vmatmul.mubr.msk.f32.vlgmr.msra.gmra.mrb[20].mxu0 %vm88_vm1, %v2238_v16  ;;  %2793 = vmatprep.subr.bf16.mxu0 %v2881_v4  ;;  %v1318_v16 = vpop.permute.xlu1 %1317 }
 0x59c   :  { %2604 = vmatprep.mubr.msk.f32.mxu0 %vm88_vm1, %v2239_v17  ;;  %v1313_v17 = vpop.permute.xlu0 %1312 }
 0x59f   :  { %2605 = vmatmul.mubr.msk.f32.gmra.mrb[22].mxu0 %vm88_vm1, %v2240_v0  ;;  %v1328_v0 = vpop.permute.xlu1 %1327 }
 0x5a0   :  { %2607 = vmatprep.mubr.msk.f32.mxu0 %vm88_vm1, %v2241_v18 }
 0x5a3   :  { %2608 = vmatmul.mubr.msk.f32.gmra.mrb[24].mxu0 %vm88_vm1, %v2242_v19  ;;  %v1323_v19 = vpop.permute.xlu0 %1322 }
 0x5a4   :  { %2610 = vmatprep.mubr.msk.f32.mxu0 %vm88_vm1, %v2243_v20 }
 0x5a7   :  { %2611 = vmatmul.mubr.msk.f32.gmra.mrb[26].mxu0 %vm88_vm1, %v2244_v21 }
 0x5a8   :  { %2657 = vmatprep.mubr.msk.f32.mxu0 %vm2882_vm11, %v2883_v5 }
 0x66e   :  { %v2603_v26 = vpop.f32.mrb[20].mxu0 }
 0x66f   :  { %v1235_v28 = vadd.f32 %v2603_v26, %v1104_v23  ;;  %v1229_v29 = vpop.f32.mrb[21].mxu0 }
 0x670   :  { %v1230_v30 = vadd.f32 %v1229_v29, %v1099_v24  ;;  %v1338_v29 = vpop.permute.xlu1 %1337 }
 0x671   :  { %vm1269_vm13 = vcmp.gt.f32.partialorder %v1235_v28, 0.0  ;;  %v1277_v31 = vmul.f32 0.01, %v1235_v28 }
 0x672   :  { %vm1268_vm14 = vcmp.gt.f32.partialorder %v1230_v30, 0.0  ;;  %v1276_v32 = vmul.f32 0.01, %v1230_v30  ;;  %v2606_v33 = vpop.f32.mrb[22].mxu0 }
 0x673   :  { %v1245_v34 = vadd.f32 %v2606_v33, %v1114_v25  ;;  %v1239_v35 = vpop.f32.mrb[23].mxu0  ;;  %v1285_v36 = vsel %vm1269_vm13, %v1235_v28, %v1277_v31 }
 0x674   :  { %v1240_v38 = vadd.f32 %v1239_v35, %v1109_v27  ;;  %v1284_v39 = vsel %vm1268_vm14, %v1230_v30, %v1276_v32  ;;  %v1333_v32 = vpop.permute.xlu0 %1332 }
 0x675   :  { %vm1271_vm15 = vcmp.gt.f32.partialorder %v1245_v34, 0.0  ;;  %v1279_v41 = vmul.f32 0.01, %v1245_v34  ;;  %v2777_v42 = vpack.c.bf16 %v1285_v36, %v1284_v39 }
 0x676   :  { %vm1270_vm3 = vcmp.gt.f32.partialorder %v1240_v38, 0.0  ;;  %v1278_v43 = vmul.f32 0.01, %v1240_v38  ;;  %v2609_v44 = vpop.f32.mrb[24].mxu0 }
 0x677   :  { %v1255_v45 = vadd.f32 %v2609_v44, %v1124_v37  ;;  %v1249_v46 = vpop.f32.mrb[25].mxu0  ;;  %2778 = vmatprep.subr.bf16.mxu1 %v2777_v42  ;;  %v1287_v47 = vsel %vm1271_vm15, %v1245_v34, %v1279_v41  ;;  %v1348_v44 = vpop.permute.xlu1 %1347 }
 0x678   :  { %v1250_v48 = vadd.f32 %v1249_v46, %v1119_v40  ;;  %2780 = vmatpush3.bf16.msra.mxu1 %v2777_v42  ;;  %v1286_v49 = vsel %vm1270_vm3, %v1240_v38, %v1278_v43 }
 0x679   :  { %vm1273_vm4 = vcmp.gt.f32.partialorder %v1255_v45, 0.0  ;;  %v1281_v50 = vmul.f32 0.01, %v1255_v45  ;;  %v2781_v51 = vpack.c.bf16 %v1287_v47, %v1286_v49  ;;  %v1343_v47 = vpop.permute.xlu0 %1342 }
 0x67a   :  { %vm1272_vm5 = vcmp.gt.f32.partialorder %v1250_v48, 0.0  ;;  %v1280_v53 = vmul.f32 0.01, %v1250_v48  ;;  %v2612_v54 = vpop.f32.mrb[26].mxu0 }
 0x67b   :  { %v1265_v57 = vadd.f32 %v2612_v54, %v1134_v52  ;;  %v1259_v58 = vpop.f32.mrb[27].mxu0  ;;  %2782 = vmatprep.subr.bf16.mxu1 %v2781_v51  ;;  %v1289_v59 = vsel %vm1273_vm4, %v1255_v45, %v1281_v50 }
 0x67c   :  { %v1260_v60 = vadd.f32 %v1259_v58, %v1129_v55  ;;  %2784 = vmatpush3.bf16.msra.mxu1 %v2781_v51  ;;  %v1288_v61 = vsel %vm1272_vm5, %v1250_v48, %v1280_v53 }
 0x67d   :  { %vm1275_vm6 = vcmp.gt.f32.partialorder %v1265_v57, 0.0  ;;  %v1283_v62 = vmul.f32 0.01, %v1265_v57  ;;  %v2785_v1 = vpack.c.bf16 %v1289_v59, %v1288_v61  ;;  %v2289_v61 = vld [vmem:[%s3498_s2 + $0xc0] sm:$0xff] }
 0x67e   :  { %vm1274_vm7 = vcmp.gt.f32.partialorder %v1260_v60, 0.0  ;;  %v1282_v2 = vmul.f32 0.01, %v1260_v60 }
 0x67f   :  { %2786 = vmatprep.subr.bf16.mxu1 %v2785_v1  ;;  %v1291_v3 = vsel %vm1275_vm6, %v1265_v57, %v1283_v62  ;;  %v1510_v62 = vpop.permute.xlu0 %1509 }
 0x680   :  { %2788 = vmatpush3.bf16.msra.mxu1 %v2785_v1  ;;  %v1290_v6 = vsel %vm1274_vm7, %v1260_v60, %v1282_v2  ;;  %v2286_v60 = vld [vmem:[%s3502_s6 + $0x8] sm:$0xf] }
 0x681   :  { %v2789_v56 = vpack.c.bf16 %v1291_v3, %v1290_v6 }
 0x683   :  { %2790 = vmatprep.subr.bf16.mxu1 %v2789_v56 }
 0x684   :  { %2792 = vmatpush3.bf16.msra.mxu1 %v2789_v56 }
 0x687   :  { %2630 = vmatmul.mubr.msk.f32.vlgmr.msra.gmra.mrb[16].mxu1 %vm302_vm2, %v2263_v7 }
 0x688   :  { %2632 = vmatprep.mubr.msk.f32.mxu1 %vm302_vm2, %v2264_v8 }
 0x68b   :  { %2633 = vmatmul.mubr.msk.f32.gmra.mrb[18].mxu1 %vm302_vm2, %v2265_v9 }
 0x68c   :  { %2635 = vmatprep.mubr.msk.f32.mxu1 %vm302_vm2, %v2266_v10 }
 0x68f   :  { %2636 = vmatmul.mubr.msk.f32.gmra.mrb[20].mxu1 %vm302_vm2, %v2267_v11 }
 0x690   :  { %2638 = vmatprep.mubr.msk.f32.mxu1 %vm302_vm2, %v2268_v12 }
 0x693   :  { %2639 = vmatmul.mubr.msk.f32.gmra.mrb[22].mxu1 %vm302_vm2, %v2269_v14 }
 0x75a   :  { %v2631_v18 = vpop.f32.mrb[16].mxu1 }
 0x75b   :  { %v1446_v20 = vadd.f32 %v2631_v18, %v1318_v16  ;;  %v1440_v21 = vpop.f32.mrb[17].mxu1 }
 0x75c   :  { %v1441_v22 = vadd.f32 %v1440_v21, %v1313_v17  ;;  %v2290_v21 = vld [vmem:[%s3498_s2 + $0xc8] sm:$0xff] }
 0x75d   :  { %vm1480_vm8 = vcmp.gt.f32.partialorder %v1446_v20, 0.0  ;;  %v1488_v23 = vmul.f32 0.01, %v1446_v20 }
 0x75e   :  { %vm1479_vm9 = vcmp.gt.f32.partialorder %v1441_v22, 0.0  ;;  %v1487_v24 = vmul.f32 0.01, %v1441_v22  ;;  %v2634_v25 = vpop.f32.mrb[18].mxu1 }
 0x75f   :  { %v1496_v26 = vsel %vm1480_vm8, %v1446_v20, %v1488_v23  ;;  %v1456_v27 = vadd.f32 %v2634_v25, %v1328_v0  ;;  %v1450_v28 = vpop.f32.mrb[19].mxu1  ;;  %v2293_v23 = vld [vmem:[%s3498_s2 + $0xe0] sm:$0xff]  ;;  %v2295_v25 = vld [vmem:[%s3498_s2 + $0xf0] sm:$0xff] }
 0x760   :  { %v1495_v30 = vsel %vm1479_vm9, %v1441_v22, %v1487_v24  ;;  %v1451_v31 = vadd.f32 %v1450_v28, %v1323_v19  ;;  %v2291_v22 = vld [vmem:[%s3498_s2 + $0xd0] sm:$0xff]  ;;  %v2294_v24 = vld [vmem:[%s3498_s2 + $0xe8] sm:$0xff]  ;;  %v1628_v28 = vpop.permute.xlu0 %1627 }
 0x761   :  { %v2794_v33 = vpack.c.bf16 %v1496_v26, %v1495_v30  ;;  %vm1482_vm10 = vcmp.gt.f32.partialorder %v1456_v27, 0.0  ;;  %v1490_v34 = vmul.f32 0.01, %v1456_v27  ;;  %v2296_v26 = vld [vmem:[%s3498_s2 + $0xf8] sm:$0xff] }
 0x762   :  { %vm1481_vm13 = vcmp.gt.f32.partialorder %v1451_v31, 0.0  ;;  %v1489_v35 = vmul.f32 0.01, %v1451_v31  ;;  %v2637_v36 = vpop.f32.mrb[20].mxu1 }
 0x763   :  { %v1498_v37 = vsel %vm1482_vm10, %v1456_v27, %v1490_v34  ;;  %v1466_v38 = vadd.f32 %v2637_v36, %v1338_v29  ;;  %v1460_v39 = vpop.f32.mrb[21].mxu1  ;;  %2795 = vmatpush3.bf16.msra.mxu0 %v2794_v33  ;;  %v2314_v27 = vld [vmem:[%s3500_s4 + $0xc0] sm:$0xff]  ;;  %v1623_v29 = vpop.permute.xlu1 %1622 }
 0x764   :  { %v1497_v40 = vsel %vm1481_vm13, %v1451_v31, %v1489_v35  ;;  %v1461_v41 = vadd.f32 %v1460_v39, %v1333_v32  ;;  %2796 = vmatprep.subr.bf16.mxu0 %v2881_v4  ;;  %2690 = vmatprep.mubr.msk.f32.mxu1 %vm302_vm2, %v2314_v27  ;;  %v1638_v30 = vpop.permute.xlu0 %1637 }
 0x765   :  { %v2797_v42 = vpack.c.bf16 %v1498_v37, %v1497_v40  ;;  %vm1484_vm14 = vcmp.gt.f32.partialorder %v1466_v38, 0.0  ;;  %v1492_v43 = vmul.f32 0.01, %v1466_v38 }
 0x766   :  { %vm1483_vm15 = vcmp.gt.f32.partialorder %v1461_v41, 0.0  ;;  %v1491_v45 = vmul.f32 0.01, %v1461_v41  ;;  %v2640_v46 = vpop.f32.mrb[22].mxu1 }
 0x767   :  { %v1500_v48 = vsel %vm1484_vm14, %v1466_v38, %v1492_v43  ;;  %v1476_v49 = vadd.f32 %v2640_v46, %v1348_v44  ;;  %v1470_v50 = vpop.f32.mrb[23].mxu1  ;;  %2798 = vmatpush3.bf16.msra.mxu0 %v2797_v42  ;;  %v1633_v32 = vpop.permute.xlu1 %1632 }
 0x768   :  { %v1499_v51 = vsel %vm1483_vm15, %v1461_v41, %v1491_v45  ;;  %v1471_v52 = vadd.f32 %v1470_v50, %v1343_v47  ;;  %2799 = vmatprep.subr.bf16.mxu0 %v2881_v4  ;;  %v1648_v41 = vpop.permute.xlu0 %1647 }
 0x769   :  { %v2800_v53 = vpack.c.bf16 %v1500_v48, %v1499_v51  ;;  %vm1486_vm3 = vcmp.gt.f32.partialorder %v1476_v49, 0.0  ;;  %v1494_v54 = vmul.f32 0.01, %v1476_v49 }
 0x76a   :  { %vm1485_vm4 = vcmp.gt.f32.partialorder %v1471_v52, 0.0  ;;  %v1493_v55 = vmul.f32 0.01, %v1471_v52 }
 0x76b   :  { %v1502_v57 = vsel %vm1486_vm3, %v1476_v49, %v1494_v54  ;;  %2801 = vmatpush3.bf16.msra.mxu0 %v2800_v53  ;;  %v1643_v44 = vpop.permute.xlu1 %1642 }
 0x76c   :  { %v1501_v58 = vsel %vm1485_vm4, %v1471_v52, %v1493_v55  ;;  %2802 = vmatprep.subr.bf16.mxu0 %v2881_v4 }
 0x76d   :  { %v2803_v59 = vpack.c.bf16 %v1502_v57, %v1501_v58  ;;  %v1658_v57 = vpop.permute.xlu0 %1657 }
 0x76f   :  { %2804 = vmatpush3.bf16.msra.mxu0 %v2803_v59 }
 0x772   :  { %2658 = vmatmul.mubr.msk.f32.vlgmr.msra.gmra.mrb[28].mxu0 %vm302_vm2, %v2286_v60  ;;  %v1653_v60 = vpop.permute.xlu1 %1652 }
 0x773   :  { %2662 = vmatprep.mubr.msk.f32.mxu0 %vm88_vm1, %v2289_v61 }
 0x845   :  { %v1581_v1 = vpop.f32.mrb[28].mxu0 }
 0x846   :  { %v1582_v2 = vadd.f32 %v1581_v1, %v1510_v62  ;;  %v2659_v3 = vpop.f32.mrb[29].mxu0 }
 0x848   :  { %2848 = vtanh.f32 %v1582_v2  ;;  %v1587_v14 = vrot.slane %v1582_v2, 2 }
 0x84a   :  { %v1589_v0 = vsub.f32 %v3227_v63, %v1587_v14  ;;  %v2292_v63 = vld [vmem:[%s3498_s2 + $0xd8] sm:$0xff] }
 0x84b   :  { %v2317_v14 = vld [vmem:[%s3500_s4 + $0xd8] sm:$0xff] }
 0x852   :  { %v2849_v6 = vpop.eup %2848 }
 0x853   :  { %v1590_v56 = vsub.f32 0.0, %v2849_v6  ;;  %v1594_v7 = vsel %vm545_vm12, %v2849_v6, 0.0 }
 0x854   :  { %v1595_v8 = vrot.slane %v1594_v7, 4 }
 0x855   :  { %v1591_v9 = vmul.f32 1.442695, %v1590_v56 }
 0x856   :  { %v1596_v10 = vadd.f32 %v1595_v8, %v1594_v7 }
 0x857   :  { %2850 = vpow2.f32 %v1591_v9 }
 0x858   :  { %v1597_v11 = vrot.slane %v1596_v10, 2 }
 0x85a   :  { %v1598_v12 = vadd.f32 %v1597_v11, %v1596_v10  ;;  %v2315_v11 = vld [vmem:[%s3500_s4 + $0xc8] sm:$0xff] }
 0x85c   :  { %v1599_v16 = vrot.slane %v1598_v12, 1 }
 0x85e   :  { %v3394_v17 = vadd.f32 %v1599_v16, %v1598_v12  ;;  %v2316_v12 = vld [vmem:[%s3500_s4 + $0xd0] sm:$0xff]  ;;  %v2318_v16 = vld [vmem:[%s3500_s4 + $0xe0] sm:$0xff] }
 0x860   :  { %v1601_v18 = vsub.f32 %v3311_v13, %v3394_v17 }
 0x861   :  { %v2851_v19 = vpop.eup %2850 }
 0x862   :  { %v3399_v20 = vmul.f32 %v2851_v19, %v1589_v0  ;;  %v2319_v0 = vld [vmem:[%s3500_s4 + $0xe8] sm:$0xff]  ;;  %v2320_v19 = vld [vmem:[%s3500_s4 + $0xf0] sm:$0xff] }
 0x864   :  { %2660 = vmatprep.subr.msk.mxu0 %vm113_vm0, %v3399_v20 }
 0x865   :  { %2661 = vmatpush3.msk.msra.mxu0 %vm113_vm0, %v3399_v20 }
 0x866   :  { %2663 = vmatmul.mubr.msk.f32.vlgmr.msra.gmra.mrb[30].mxu0 %vm88_vm1, %v2290_v21  ;;  %2821 = vmatprep.subr.bf16.mxu0 %v2881_v4  ;;  %v2321_v21 = vld [vmem:[%s3500_s4 + $0xf8] sm:$0xff] }
 0x867   :  { %2665 = vmatprep.mubr.msk.f32.mxu0 %vm88_vm1, %v2291_v22  ;;  %v1842_v22 = vpop.permute.xlu0 %1841 }
 0x86a   :  { %2666 = vmatmul.mubr.msk.f32.gmra.mrb[32].mxu0 %vm88_vm1, %v2292_v63  ;;  %v1837_v63 = vpop.permute.xlu1 %1836 }
 0x86b   :  { %2668 = vmatprep.mubr.msk.f32.mxu0 %vm88_vm1, %v2293_v23  ;;  %v1852_v23 = vpop.permute.xlu0 %1851 }
 0x86e   :  { %2669 = vmatmul.mubr.msk.f32.gmra.mrb[34].mxu0 %vm88_vm1, %v2294_v24 }
 0x86f   :  { %2671 = vmatprep.mubr.msk.f32.mxu0 %vm88_vm1, %v2295_v25  ;;  %v1847_v25 = vpop.permute.xlu1 %1846 }
 0x872   :  { %2672 = vmatmul.mubr.msk.f32.gmra.mrb[36].mxu0 %vm88_vm1, %v2296_v26 }
 0x873   :  { %2718 = vmatprep.mubr.msk.f32.mxu0 %vm2882_vm11, %v2883_v5 }
 0x939   :  { %v2664_v31 = vpop.f32.mrb[30].mxu0 }
 0x93a   :  { %v1759_v33 = vadd.f32 %v2664_v31, %v1628_v28  ;;  %v1753_v34 = vpop.f32.mrb[31].mxu0 }
 0x93b   :  { %v1754_v35 = vadd.f32 %v1753_v34, %v1623_v29 }
 0x93c   :  { %vm1793_vm0 = vcmp.gt.f32.partialorder %v1759_v33, 0.0  ;;  %v1801_v36 = vmul.f32 0.01, %v1759_v33 }
 0x93d   :  { %vm1792_vm1 = vcmp.gt.f32.partialorder %v1754_v35, 0.0  ;;  %v1800_v37 = vmul.f32 0.01, %v1754_v35  ;;  %v2667_v38 = vpop.f32.mrb[32].mxu0 }
 0x93e   :  { %v1769_v5 = vadd.f32 %v2667_v38, %v1638_v30  ;;  %v1763_v39 = vpop.f32.mrb[33].mxu0  ;;  %v1809_v40 = vsel %vm1793_vm0, %v1759_v33, %v1801_v36  ;;  %v1857_v38 = vpop.permute.xlu1 %1856 }
 0x93f   :  { %v1764_v42 = vadd.f32 %v1763_v39, %v1633_v32  ;;  %v1808_v43 = vsel %vm1792_vm1, %v1754_v35, %v1800_v37  ;;  %v1862_v35 = vpop.permute.xlu0 %1861 }
 0x940   :  { %vm1795_vm11 = vcmp.gt.f32.partialorder %v1769_v5, 0.0  ;;  %v1803_v45 = vmul.f32 0.01, %v1769_v5  ;;  %v2805_v46 = vpack.c.bf16 %v1809_v40, %v1808_v43 }
 0x941   :  { %vm1794_vm5 = vcmp.gt.f32.partialorder %v1764_v42, 0.0  ;;  %v1802_v47 = vmul.f32 0.01, %v1764_v42  ;;  %v2670_v48 = vpop.f32.mrb[34].mxu0 }
 0x942   :  { %v1779_v49 = vadd.f32 %v2670_v48, %v1648_v41  ;;  %v1773_v50 = vpop.f32.mrb[35].mxu0  ;;  %2806 = vmatprep.subr.bf16.mxu1 %v2805_v46  ;;  %v1811_v51 = vsel %vm1795_vm11, %v1769_v5, %v1803_v45 }
 0x943   :  { %v1774_v52 = vadd.f32 %v1773_v50, %v1643_v44  ;;  %2808 = vmatpush3.bf16.msra.mxu1 %v2805_v46  ;;  %v1810_v53 = vsel %vm1794_vm5, %v1764_v42, %v1802_v47 }
 0x944   :  { %vm1797_vm6 = vcmp.gt.f32.partialorder %v1779_v49, 0.0  ;;  %v1805_v54 = vmul.f32 0.01, %v1779_v49  ;;  %v2809_v55 = vpack.c.bf16 %v1811_v51, %v1810_v53 }
 0x945   :  { %vm1796_vm7 = vcmp.gt.f32.partialorder %v1774_v52, 0.0  ;;  %v1804_v58 = vmul.f32 0.01, %v1774_v52  ;;  %v2673_v59 = vpop.f32.mrb[36].mxu0 }
 0x946   :  { %v1789_v61 = vadd.f32 %v2673_v59, %v1658_v57  ;;  %v1783_v62 = vpop.f32.mrb[37].mxu0  ;;  %2810 = vmatprep.subr.bf16.mxu1 %v2809_v55  ;;  %v1813_v1 = vsel %vm1797_vm6, %v1779_v49, %v1805_v54  ;;  %v1872_v49 = vpop.permute.xlu0 %1871 }
 0x947   :  { %v1784_v2 = vadd.f32 %v1783_v62, %v1653_v60  ;;  %2812 = vmatpush3.bf16.msra.mxu1 %v2809_v55  ;;  %v1812_v3 = vsel %vm1796_vm7, %v1774_v52, %v1804_v58  ;;  %v1867_v52 = vpop.permute.xlu1 %1866 }
 0x948   :  { %vm1799_vm8 = vcmp.gt.f32.partialorder %v1789_v61, 0.0  ;;  %v1807_v6 = vmul.f32 0.01, %v1789_v61  ;;  %v2813_v56 = vpack.c.bf16 %v1813_v1, %v1812_v3  ;;  %v2338_v3 = vld [vmem:[%s3502_s6 + $0xc] sm:$0xf]  ;;  %s2884_s6 = smov [#allocation2]  }
 0x949   :  { %vm1798_vm9 = vcmp.gt.f32.partialorder %v1784_v2, 0.0  ;;  %v1806_v7 = vmul.f32 0.01, %v1784_v2  ;;  %s2159_s29 = sshll.u32 %s2884_s6, 4  ;;  %s2160_s29 = int_to_ptr.vmem [resolvable:$true] %s2159_s29 }
 0x94a   :  { %2814 = vmatprep.subr.bf16.mxu1 %v2813_v56  ;;  %v1815_v8 = vsel %vm1799_vm8, %v1789_v61, %v1807_v6  ;;  %s2856_s30 = scalar_lea.vmem %s2160_s29, 16  ;;  %s2860_s9 = scalar_lea.vmem %s2160_s29, 32 }
 0x94b   :  { %2816 = vmatpush3.bf16.msra.mxu1 %v2813_v56  ;;  %v1814_v9 = vsel %vm1798_vm9, %v1784_v2, %v1806_v7  ;;  %v2034_v6 = vpop.permute.xlu1 %2033  ;;  %p2857_p0 = scmp.ne.s32.totalorder %s2160_s29, %s2856_s30  ;;  %p2861_p1 = scmp.lt.s32.totalorder %s2160_s29, %s2160_s29 }
 0x94c   :  { %v2817_v10 = vpack.c.bf16 %v1815_v8, %v1814_v9  ;;  %p2862_p2 = scmp.lt.s32.totalorder %s2860_s9, %s2856_s30 }
 0x94e   :  { %2818 = vmatprep.subr.bf16.mxu1 %v2817_v10  ;;  %p2863_p3 = por %p2862_p2, %p2861_p1 }
 0x94f   :  { %2820 = vmatpush3.bf16.msra.mxu1 %v2817_v10 }
 0x950   :  { %p2864_p4 = pnand %p2863_p3, %p2857_p0 }
 0x952   :  { %2691 = vmatmul.mubr.msk.f32.vlgmr.msra.gmra.mrb[24].mxu1 %vm302_vm2, %v2315_v11 }
 0x953   :  { %2693 = vmatprep.mubr.msk.f32.mxu1 %vm302_vm2, %v2316_v12 }
 0x956   :  { %2694 = vmatmul.mubr.msk.f32.gmra.mrb[26].mxu1 %vm302_vm2, %v2317_v14 }
 0x957   :  { %2696 = vmatprep.mubr.msk.f32.mxu1 %vm302_vm2, %v2318_v16 }
 0x95a   :  { %2697 = vmatmul.mubr.msk.f32.gmra.mrb[28].mxu1 %vm302_vm2, %v2319_v0 }
 0x95b   :  { %2699 = vmatprep.mubr.msk.f32.mxu1 %vm302_vm2, %v2320_v19 }
 0x95e   :  { %2700 = vmatmul.mubr.msk.f32.gmra.mrb[30].mxu1 %vm302_vm2, %v2321_v21 }
 0xa25   :  { %v2692_v24 = vpop.f32.mrb[24].mxu1 }
 0xa26   :  { %v1970_v26 = vadd.f32 %v2692_v24, %v1842_v22  ;;  %v1964_v27 = vpop.f32.mrb[25].mxu1 }
 0xa27   :  { %v1965_v28 = vadd.f32 %v1964_v27, %v1837_v63 }
 0xa28   :  { %vm2004_vm10 = vcmp.gt.f32.partialorder %v1970_v26, 0.0  ;;  %v2012_v29 = vmul.f32 0.01, %v1970_v26 }
 0xa29   :  { %vm2003_vm13 = vcmp.gt.f32.partialorder %v1965_v28, 0.0  ;;  %v2011_v30 = vmul.f32 0.01, %v1965_v28  ;;  %v2695_v31 = vpop.f32.mrb[26].mxu1 }
 0xa2a   :  { %v2020_v32 = vsel %vm2004_vm10, %v1970_v26, %v2012_v29  ;;  %v1980_v33 = vadd.f32 %v2695_v31, %v1852_v23  ;;  %v1974_v34 = vpop.f32.mrb[27].mxu1 }
 0xa2b   :  { %v2019_v36 = vsel %vm2003_vm13, %v1965_v28, %v2011_v30  ;;  %v1975_v37 = vadd.f32 %v1974_v34, %v1847_v25 }
 0xa2c   :  { %v2822_v5 = vpack.c.bf16 %v2020_v32, %v2019_v36  ;;  %vm2006_vm14 = vcmp.gt.f32.partialorder %v1980_v33, 0.0  ;;  %v2014_v39 = vmul.f32 0.01, %v1980_v33 }
 0xa2d   :  { %vm2005_vm15 = vcmp.gt.f32.partialorder %v1975_v37, 0.0  ;;  %v2013_v40 = vmul.f32 0.01, %v1975_v37  ;;  %v2698_v41 = vpop.f32.mrb[28].mxu1 }
 0xa2e   :  { %v2022_v42 = vsel %vm2006_vm14, %v1980_v33, %v2014_v39  ;;  %v1990_v43 = vadd.f32 %v2698_v41, %v1862_v35  ;;  %v1984_v44 = vpop.f32.mrb[29].mxu1  ;;  %2823 = vmatpush3.bf16.msra.mxu0 %v2822_v5 }
 0xa2f   :  { %v2021_v45 = vsel %vm2005_vm15, %v1975_v37, %v2013_v40  ;;  %v1985_v46 = vadd.f32 %v1984_v44, %v1857_v38  ;;  %2824 = vmatprep.subr.bf16.mxu0 %v2881_v4 }
 0xa30   :  { %v2825_v47 = vpack.c.bf16 %v2022_v42, %v2021_v45  ;;  %vm2008_vm3 = vcmp.gt.f32.partialorder %v1990_v43, 0.0  ;;  %v2016_v48 = vmul.f32 0.01, %v1990_v43 }
 0xa31   :  { %vm2007_vm4 = vcmp.gt.f32.partialorder %v1985_v46, 0.0  ;;  %v2015_v50 = vmul.f32 0.01, %v1985_v46  ;;  %v2701_v51 = vpop.f32.mrb[30].mxu1 }
 0xa32   :  { %v2024_v53 = vsel %vm2008_vm3, %v1990_v43, %v2016_v48  ;;  %v2000_v54 = vadd.f32 %v2701_v51, %v1872_v49  ;;  %v1994_v55 = vpop.f32.mrb[31].mxu1  ;;  %2826 = vmatpush3.bf16.msra.mxu0 %v2825_v47 }
 0xa33   :  { %v2023_v57 = vsel %vm2007_vm4, %v1985_v46, %v2015_v50  ;;  %v1995_v58 = vadd.f32 %v1994_v55, %v1867_v52  ;;  %2827 = vmatprep.subr.bf16.mxu0 %v2881_v4 }
 0xa34   :  { %v2828_v59 = vpack.c.bf16 %v2024_v53, %v2023_v57  ;;  %vm2010_vm0 = vcmp.gt.f32.partialorder %v2000_v54, 0.0  ;;  %v2018_v60 = vmul.f32 0.01, %v2000_v54 }
 0xa35   :  { %vm2009_vm1 = vcmp.gt.f32.partialorder %v1995_v58, 0.0  ;;  %v2017_v61 = vmul.f32 0.01, %v1995_v58 }
 0xa36   :  { %v2026_v62 = vsel %vm2010_vm0, %v2000_v54, %v2018_v60  ;;  %2829 = vmatpush3.bf16.msra.mxu0 %v2828_v59 }
 0xa37   :  { %v2025_v1 = vsel %vm2009_vm1, %v1995_v58, %v2017_v61  ;;  %2830 = vmatprep.subr.bf16.mxu0 %v2881_v4  ;;  %v2134_v4 = vmul.f32 %v3399_v20, %v3399_v20 }
 0xa38   :  { %v2831_v2 = vpack.c.bf16 %v2026_v62, %v2025_v1 }
 0xa39   :  { %v2135_v21 = vsel %vm545_vm12, %v2134_v4, 0.0 }
 0xa3a   :  { %2832 = vmatpush3.bf16.msra.mxu0 %v2831_v2  ;;  %v2136_v23 = vrot.slane %v2135_v21, 4 }
 0xa3c   :  { %v2137_v28 = vadd.f32 %v2136_v23, %v2135_v21 }
 0xa3d   :  { %2719 = vmatmul.mubr.msk.f32.vlgmr.msra.gmra.mrb[38].mxu0 %vm302_vm2, %v2338_v3  ;;  %vm2146_vm2 = vcmask 130048  }
 0xa3e   :  { %v2138_v30 = vrot.slane %v2137_v28, 2 }
 0xa40   :  { %v2139_v34 = vadd.f32 %v2138_v30, %v2137_v28 }
 0xa42   :  { %v2140_v37 = vrot.slane %v2139_v34, 1 }
 0xb10   :  { %v2105_v56 = vpop.f32.mrb[38].mxu0 }
 0xb11   :  { %v2106_v7 = vadd.f32 %v2105_v56, %v2034_v6  ;;  %v2720_v8 = vpop.f32.mrb[39].mxu0 }
 0xb13   :  { %2852 = vtanh.f32 %v2106_v7  ;;  %v2111_v22 = vrot.slane %v2106_v7, 2 }
 0xb15   :  { %v2113_v25 = vsub.f32 %v3313_v15, %v2111_v22  ;;  %v2141_v15 = vadd.f32 %v2140_v37, %v2139_v34 }
 0xb1d   :  { %v2853_v9 = vpop.eup %2852 }
 0xb1e   :  { %v2114_v10 = vsub.f32 0.0, %v2853_v9  ;;  %v2118_v11 = vsel %vm545_vm12, %v2853_v9, 0.0 }
 0xb1f   :  { %v2119_v12 = vrot.slane %v2118_v11, 4 }
 0xb20   :  { %v2115_v14 = vmul.f32 1.442695, %v2114_v10 }
 0xb21   :  { %v2120_v16 = vadd.f32 %v2119_v12, %v2118_v11 }
 0xb22   :  { %2854 = vpow2.f32 %v2115_v14 }
 0xb23   :  { %v2121_v0 = vrot.slane %v2120_v16, 2 }
 0xb25   :  { %v2122_v19 = vadd.f32 %v2121_v0, %v2120_v16 }
 0xb27   :  { %v2123_v63 = vrot.slane %v2122_v19, 1 }
 0xb29   :  { %v2124_v24 = vadd.f32 %v2123_v63, %v2122_v19 }
 0xb2b   :  { %v2125_v26 = vsub.f32 %v1601_v18, %v2124_v24 }
 0xb2c   :  { %v2855_v27 = vpop.eup %2854 }
 0xb2d   :  { %v2117_v29 = vmul.f32 %v2855_v27, %v2113_v25 }
 0xb2f   :  { %v2126_v20 = vmul.f32 %v2117_v29, %v2117_v29 }
 0xb31   :  { %v2127_v31 = vsel %vm545_vm12, %v2126_v20, 0.0  ;;  %vm2151_vm12 = vcmask 0  }
 0xb32   :  { %v2128_v32 = vrot.slane %v2127_v31, 4 }
 0xb34   :  { %v2129_v33 = vadd.f32 %v2128_v32, %v2127_v31 }
 0xb36   :  { %v2130_v35 = vrot.slane %v2129_v33, 2 }
 0xb38   :  { %v2131_v36 = vadd.f32 %v2130_v35, %v2129_v33 }
 0xb3a   :  { %v2132_v38 = vrot.slane %v2131_v36, 1 }
 0xb3c   :  { %v2133_v5 = vadd.f32 %v2132_v38, %v2131_v36 }
 0xb3e   :  { %v2142_v39 = vadd.f32 %v2141_v15, %v2133_v5 }
 0xb40   :  { %v2143_v40 = vmul.f32 0.5, %v2142_v39 }
 0xb42   :  { %v2144_v13 = vsub.f32 -3.675754, %v2143_v40 }
 0xb44   :  { %v2145_v17 = vadd.f32 %v2144_v13, %v2125_v26 }
 0xb46   :  { %v2147_v18 = vsel %vm2146_vm2, %v2145_v17, 0.0 }
 0xb47   :  { %2148 = vadd.xlane.f32.xlu0 %v2147_v18 }
 0xbd4   :  { %v2149_v41 = vpop.xlane.xlu0 %2148 }
 0xbd5   :  { %v2150_v42 = vsub.f32 0.0, %v2149_v41 }
 0xbd7   :  { %2152 = vst.msk [vmem:[#allocation2] sm:$0x1] %vm2151_vm12, %v2150_v42 }
 0xbd8   :  { %2867 = shalt.err (!%p2864_p4)
}
 0xbd9   :  { %s2868_s12 = scalar_lea.hbm %s3504_s8, 16 }
 0xbda   :  { %p2869_p5 = scmp.ne.s32.totalorder %s3504_s8, %s2868_s12  ;;  %p2872_p6 = scmp.lt.u32.totalorder %s2868_s12, %s3504_s8 }
 0xbdc   :  { %p2874_p7 = pnand %p2872_p6, %p2869_p5 }
 0xbde   :  { %2877 = shalt.err (!%p2874_p7)
}
 0xbdf   :  { %2162 = dma.vmem_to_hbm [thread:$0]  %s2160_s29, 16, %s3504_s8, [#allocation3]  }
 0xbe0   :  { %2878 = dma.done.wait [#allocation3], 16  }
 0xbe1   :  { %2879 = vsyncadd [#allocation3], 4294967280 }
 0xbe2   :  { %2166 = vsyncpa [#allocation3], 1 }

</bundles_post_ra>
